<compile_context>
chip_gen: v7x
topology: tpu7x:2x2x1
jax: 0.10.0
libtpu: 0.0.40
codegen_flags: <defaults>
</compile_context>

<pallas_src>
import functools

import jax
import jax.numpy as jnp
from jax.experimental import pallas as pl
from jax.experimental.pallas import tpu as pltpu

NEG_SLOPE = 0.01            # nn.LeakyReLU default negative_slope
SOFTPLUS_BETA = 5.0         # Softplus(beta=5)
SOFTPLUS_THRESHOLD = 20.0   # PyTorch Softplus default threshold
LANE = 128                  # TPU lane width


def _round_up(n, m):
    return ((n + m - 1) // m) * m


def kktnn_kernel(
    x_ref,
    w0_ref, b0_ref,          # shared input linear              (in, H) bf16 / (1, H) act
    wrs_ref, brs_ref,        # 4 shared residual-block linears  (4, H, H) bf16 / (4, 1, H) act
    wf_ref, bf_ref,          # shared final linear              (H, H) bf16 / (1, H) act
    wh1_ref, bh1_ref,        # fused first head resblock linears (H, 3H) bf16 / (1, 3H) act
    wh2_ref, bh2_ref,        # second head resblock linears      (3, H, H) bf16 / (3, 1, H) act
    wd_ref, we_ref, wi_ref,  # head linears, zero-padded to disjoint lane ranges (H, P) bf16
    bh_ref,                  # combined head bias                (1, P) f32
    out_ref,                 # packed head output                (tile, P)
    emb_ref,                 # VMEM scratch (tile, H) act_dtype
    *, nd, ne, hidden, act_dtype,
):
    H = hidden

    def lrelu(v):
        # max-form LeakyReLU: 2 VALU ops (mul + max) instead of cmp+mul+select.
        return jnp.maximum(v, NEG_SLOPE * v)

    def linear(h, w, b):
        # bf16 MXU operands, f32 accumulation, single cast to act_dtype, then
        # the bias add (and everything downstream) stays in act_dtype.
        acc = jnp.dot(h.astype(jnp.bfloat16), w,
                      preferred_element_type=jnp.float32)
        return acc.astype(act_dtype) + b

    def resblock(h, w, b):
        out = lrelu(linear(h, w, b))
        return lrelu(out + h)

    x = x_ref[...].astype(act_dtype)

    # ---- shared trunk ----
    h = lrelu(linear(x, w0_ref[...], b0_ref[...]))
    for i in range(4):                       # 4 shared residual blocks
        h = resblock(h, wrs_ref[i], brs_ref[i])
    emb_ref[...] = linear(h, wf_ref[...], bf_ref[...])
    emb = emb_ref[...]

    # ---- fused first residual block of all three heads (N = 3H matmul) ----
    big = lrelu(linear(emb, wh1_ref[...], bh1_ref[...]))     # (tile, 3H)
    d = lrelu(big[:, 0 * H:1 * H] + emb)
    e = lrelu(big[:, 1 * H:2 * H] + emb)
    q = lrelu(big[:, 2 * H:3 * H] + emb)

    # ---- second residual block of each head ----
    d = resblock(d, wh2_ref[0], bh2_ref[0])
    e = resblock(e, wh2_ref[1], bh2_ref[1])
    q = resblock(q, wh2_ref[2], bh2_ref[2])

    # ---- packed head linears: each weight is nonzero only in its own lane
    #      range, so summing the three matmuls yields all heads in one tile ----
    z = (jnp.dot(d.astype(jnp.bfloat16), wd_ref[...],
                 preferred_element_type=jnp.float32)
         + jnp.dot(e.astype(jnp.bfloat16), we_ref[...],
                   preferred_element_type=jnp.float32)
         + jnp.dot(q.astype(jnp.bfloat16), wi_ref[...],
                   preferred_element_type=jnp.float32)
         + bh_ref[...])

    lane = jax.lax.broadcasted_iota(jnp.int32, z.shape, 1)
    tanh_v = jnp.tanh(z)                                     # decision lanes
    zb = SOFTPLUS_BETA * z
    sp_v = jnp.where(zb > SOFTPLUS_THRESHOLD, z,             # ineq lanes
                     jnp.log1p(jnp.exp(zb)) / SOFTPLUS_BETA)
    packed = jnp.where(lane < nd, tanh_v,
                       jnp.where(lane < nd + ne, z, sp_v))
    out_ref[...] = packed.astype(out_ref.dtype)


def init_params(key, input_dim, num_eq, num_ineq, num_dec, hidden):
    """Deterministic synthetic parameters (weights stored as (in, out), f32)."""
    ks = jax.random.split(key, 13)
    s = 0.05
    return {
        "w0": jax.random.normal(ks[0], (input_dim, hidden), jnp.float32) * s,
        "b0": jax.random.normal(ks[1], (1, hidden), jnp.float32) * s,
        # 10 residual-block linears: 0..3 shared, 4..5 decision, 6..7 eq, 8..9 ineq
        "wr": jax.random.normal(ks[2], (10, hidden, hidden), jnp.float32) * s,
        "br": jax.random.normal(ks[3], (10, 1, hidden), jnp.float32) * s,
        "wf": jax.random.normal(ks[4], (hidden, hidden), jnp.float32) * s,
        "bf": jax.random.normal(ks[5], (1, hidden), jnp.float32) * s,
        "wd": jax.random.normal(ks[6], (hidden, num_dec), jnp.float32) * s,
        "bd": jax.random.normal(ks[7], (1, num_dec), jnp.float32) * s,
        "we": jax.random.normal(ks[8], (hidden, num_eq), jnp.float32) * s,
        "be": jax.random.normal(ks[9], (1, num_eq), jnp.float32) * s,
        "wi": jax.random.normal(ks[10], (hidden, num_ineq), jnp.float32) * s,
        "bi": jax.random.normal(ks[11], (1, num_ineq), jnp.float32) * s,
    }


def _place_head(w, b, total_pad, start):
    """Zero-pad a head's weight/bias into lanes [start, start+n) of total_pad."""
    h_dim, n = w.shape
    wp = jnp.zeros((h_dim, total_pad), w.dtype).at[:, start:start + n].set(w)
    bp = jnp.zeros((1, total_pad), b.dtype).at[:, start:start + n].set(b)
    return wp, bp


@functools.partial(jax.jit, static_argnames=("tile_b", "act_dtype"))
def kktnn_forward(x, params, tile_b=512, act_dtype=jnp.bfloat16):
    # NOTE: act_dtype=jnp.float32 keeps the full-precision elementwise path
    # (recommended on v5e, which has no bf16 VPU).
    B, input_dim = x.shape
    H = params["w0"].shape[1]
    nd = params["wd"].shape[1]
    ne = params["we"].shape[1]
    ni = params["wi"].shape[1]

    # ---- batch tiling: big tiles amortize the ~0.35us per-step overhead;
    #      for B >= 64 keep at least 2 grid steps so both v7x TCs get work ----
    tile = min(tile_b, _round_up(B, 8))
    if B >= 64 and tile >= B:
        tile = min(tile, _round_up(pl.cdiv(B, 2), 8))
    b_pad = _round_up(B, tile)
    if b_pad != B:
        x = jnp.pad(x, ((0, b_pad - B), (0, 0)))
    grid = (b_pad // tile,)

    # ---- packed head layout: dec=[0,nd), eq=[nd,nd+ne), ineq=[nd+ne,total) ----
    total = nd + ne + ni
    total_pad = _round_up(max(total, LANE), LANE)

    bf16 = jnp.bfloat16
    w0 = params["w0"].astype(bf16)
    wf = params["wf"].astype(bf16)
    wrs = params["wr"][0:4].astype(bf16)                       # shared resblocks
    brs = params["br"][0:4].astype(act_dtype)
    # fused first head resblocks (decision, eq, ineq) -> (H, 3H)
    wh1 = jnp.concatenate(
        [params["wr"][4], params["wr"][6], params["wr"][8]], axis=1).astype(bf16)
    bh1 = jnp.concatenate(
        [params["br"][4], params["br"][6], params["br"][8]], axis=1).astype(act_dtype)
    # second head resblocks -> (3, H, H)
    wh2 = jnp.stack(
        [params["wr"][5], params["wr"][7], params["wr"][9]], axis=0).astype(bf16)
    bh2 = jnp.stack(
        [params["br"][5], params["br"][7], params["br"][9]], axis=0).astype(act_dtype)
    # head output linears placed into disjoint lane ranges of one 128-wide tile
    wd_p, bd_p = _place_head(params["wd"].astype(bf16), params["bd"], total_pad, 0)
    we_p, be_p = _place_head(params["we"].astype(bf16), params["be"], total_pad, nd)
    wi_p, bi_p = _place_head(params["wi"].astype(bf16), params["bi"], total_pad, nd + ne)
    bh = bd_p + be_p + bi_p                                    # combined f32 bias
    b0 = params["b0"].astype(act_dtype)
    bfin = params["bf"].astype(act_dtype)

    def full_spec(shape):
        # whole-array block, same block for every grid step
        return pl.BlockSpec(shape, lambda i, _n=len(shape): (0,) * _n)

    in_specs = [
        pl.BlockSpec((tile, input_dim), lambda i: (i, 0)),
        full_spec(w0.shape), full_spec(b0.shape),
        full_spec(wrs.shape), full_spec(brs.shape),
        full_spec(wf.shape), full_spec(bfin.shape),
        full_spec(wh1.shape), full_spec(bh1.shape),
        full_spec(wh2.shape), full_spec(bh2.shape),
        full_spec(wd_p.shape), full_spec(we_p.shape), full_spec(wi_p.shape),
        full_spec(bh.shape),
    ]
    out_specs = pl.BlockSpec((tile, total_pad), lambda i: (i, 0))
    out_shape = jax.ShapeDtypeStruct((b_pad, total_pad), x.dtype)

    kernel = functools.partial(
        kktnn_kernel, nd=nd, ne=ne, hidden=H, act_dtype=act_dtype)

    packed = pl.pallas_call(
        kernel,
        grid=grid,
        in_specs=in_specs,
        out_specs=out_specs,
        out_shape=out_shape,
        scratch_shapes=[pltpu.VMEM((tile, H), act_dtype)],
        compiler_params=pltpu.CompilerParams(
            # batch axis is embarrassingly parallel -> megacore-shardable on v7x
            dimension_semantics=("parallel",),
            # only pin the scoped VMEM limit once tiles get big (v7x: 64 MiB phys)
            vmem_limit_bytes=(48 * 1024 * 1024) if tile >= 1024 else None,
        ),
    )(
        x,
        w0, b0, wrs, brs, wf, bfin,
        wh1, bh1, wh2, bh2,
        wd_p, we_p, wi_p, bh,
    )
    # strip batch padding and split the packed lanes back into the three heads
    dec = packed[:B, 0:nd]
    eq = packed[:B, nd:nd + ne]
    ineq = packed[:B, nd + ne:nd + ne + ni]
    return dec, eq, ineq


if __name__ == "__main__":
    # Small, MXU-friendly shapes consistent with KKTNN's forward:
    #   x: (batch, input_dim) -> (decision (B,nd), dual_eq (B,ne), dual_ineq (B,ni))
    batch = 8
    input_dim = 16
    hidden = 128
    num_dec = 8
    num_eq = 4
    num_ineq = 6

    key = jax.random.PRNGKey(0)
    k_x, k_p = jax.random.split(key)
    x = jax.random.normal(k_x, (batch, input_dim), jnp.float32)
    params = init_params(k_p, input_dim, num_eq, num_ineq, num_dec, hidden)

    decision, dual_eq, dual_ineq = kktnn_forward(x, params)
    jax.block_until_ready((decision, dual_eq, dual_ineq))

    assert decision.shape == (batch, num_dec)
    assert dual_eq.shape == (batch, num_eq)
    assert dual_ineq.shape == (batch, num_ineq)
    # Tanh output bounded, Softplus output non-negative
    assert bool(jnp.all(jnp.abs(decision) <= 1.0))
    assert bool(jnp.all(dual_ineq >= 0.0))

    print("KERNEL_OK")
</pallas_src>

<mosaic_0001>
module attributes {stable_mosaic.version = 11 : i64} {
  func.func @kktnn_kernel(%arg0: i32, %arg1: memref<8x16xf32, #tpu.memory_space<vmem>>, %arg2: memref<16x128xbf16, #tpu.memory_space<vmem>>, %arg3: memref<1x128xbf16, #tpu.memory_space<vmem>>, %arg4: memref<4x128x128xbf16, #tpu.memory_space<vmem>>, %arg5: memref<4x1x128xbf16, #tpu.memory_space<vmem>>, %arg6: memref<128x128xbf16, #tpu.memory_space<vmem>>, %arg7: memref<1x128xbf16, #tpu.memory_space<vmem>>, %arg8: memref<128x384xbf16, #tpu.memory_space<vmem>>, %arg9: memref<1x384xbf16, #tpu.memory_space<vmem>>, %arg10: memref<3x128x128xbf16, #tpu.memory_space<vmem>>, %arg11: memref<3x1x128xbf16, #tpu.memory_space<vmem>>, %arg12: memref<128x128xbf16, #tpu.memory_space<vmem>>, %arg13: memref<128x128xbf16, #tpu.memory_space<vmem>>, %arg14: memref<128x128xbf16, #tpu.memory_space<vmem>>, %arg15: memref<1x128xf32, #tpu.memory_space<vmem>>, %arg16: memref<8x128xf32, #tpu.memory_space<vmem>>, %arg17: memref<8x128xbf16, #tpu.memory_space<vmem>>) attributes {dimension_semantics = [#tpu.dimension_semantics<parallel>], iteration_bounds = array<i64: 1>, scalar_prefetch = 0 : i64, scratch_operands = 1 : i64, tpu.core_type = #tpu.core_type<tc>, window_params = [{transform_indices = @transform_0, window_bounds = array<i64: 8, 16>}, {pipeline_mode = #tpu.pipeline_mode<synchronous>, transform_indices = @transform_1, window_bounds = array<i64: 16, 128>}, {pipeline_mode = #tpu.pipeline_mode<synchronous>, transform_indices = @transform_2, window_bounds = array<i64: 1, 128>}, {pipeline_mode = #tpu.pipeline_mode<synchronous>, transform_indices = @transform_3, window_bounds = array<i64: 4, 128, 128>}, {pipeline_mode = #tpu.pipeline_mode<synchronous>, transform_indices = @transform_4, window_bounds = array<i64: 4, 1, 128>}, {pipeline_mode = #tpu.pipeline_mode<synchronous>, transform_indices = @transform_5, window_bounds = array<i64: 128, 128>}, {pipeline_mode = #tpu.pipeline_mode<synchronous>, transform_indices = @transform_6, window_bounds = array<i64: 1, 128>}, {pipeline_mode = #tpu.pipeline_mode<synchronous>, transform_indices = @transform_7, window_bounds = array<i64: 128, 384>}, {pipeline_mode = #tpu.pipeline_mode<synchronous>, transform_indices = @transform_8, window_bounds = array<i64: 1, 384>}, {pipeline_mode = #tpu.pipeline_mode<synchronous>, transform_indices = @transform_9, window_bounds = array<i64: 3, 128, 128>}, {pipeline_mode = #tpu.pipeline_mode<synchronous>, transform_indices = @transform_10, window_bounds = array<i64: 3, 1, 128>}, {pipeline_mode = #tpu.pipeline_mode<synchronous>, transform_indices = @transform_11, window_bounds = array<i64: 128, 128>}, {pipeline_mode = #tpu.pipeline_mode<synchronous>, transform_indices = @transform_12, window_bounds = array<i64: 128, 128>}, {pipeline_mode = #tpu.pipeline_mode<synchronous>, transform_indices = @transform_13, window_bounds = array<i64: 128, 128>}, {pipeline_mode = #tpu.pipeline_mode<synchronous>, transform_indices = @transform_14, window_bounds = array<i64: 1, 128>}, {transform_indices = @transform_15, window_bounds = array<i64: 8, 128>}]} {
    %c0 = arith.constant 0 : index
    %c0_0 = arith.constant 0 : index
    %0 = vector.load %arg1[%c0, %c0_0] : memref<8x16xf32, #tpu.memory_space<vmem>>, vector<8x16xf32>
    %1 = arith.truncf %0 : vector<8x16xf32> to vector<8x16xbf16>
    %c0_1 = arith.constant 0 : index
    %c0_2 = arith.constant 0 : index
    %2 = vector.load %arg2[%c0_1, %c0_2] : memref<16x128xbf16, #tpu.memory_space<vmem>>, vector<16x128xbf16>
    %c0_3 = arith.constant 0 : index
    %c0_4 = arith.constant 0 : index
    %3 = vector.load %arg3[%c0_3, %c0_4] : memref<1x128xbf16, #tpu.memory_space<vmem>>, vector<1x128xbf16>
    %cst = arith.constant dense<0.000000e+00> : vector<8x128xf32>
    %4 = tpu.matmul %1, %2, %cst {dimension_numbers = #tpu.dot_dimension_numbers<[1], [0], [0], [1], [0, 0, 1, 1], [], []>} : vector<8x16xbf16>, vector<16x128xbf16>, vector<8x128xf32> -> vector<8x128xf32>
    %5 = arith.truncf %4 : vector<8x128xf32> to vector<8x128xbf16>
    %6 = vector.broadcast %3 : vector<1x128xbf16> to vector<8x128xbf16>
    %7 = arith.addf %5, %6 : vector<8x128xbf16>
    %cst_5 = arith.constant 1.000980e-02 : bf16
    %8 = vector.broadcast %cst_5 : bf16 to vector<8x128xbf16>
    %9 = arith.mulf %8, %7 : vector<8x128xbf16>
    %10 = arith.maximumf %7, %9 : vector<8x128xbf16>
    %c0_6 = arith.constant 0 : index
    %c0_7 = arith.constant 0 : index
    %c0_8 = arith.constant 0 : index
    %11 = vector.load %arg4[%c0_6, %c0_7, %c0_8] : memref<4x128x128xbf16, #tpu.memory_space<vmem>>, vector<1x128x128xbf16>
    %12 = vector.shape_cast %11 : vector<1x128x128xbf16> to vector<128x128xbf16>
    %c0_9 = arith.constant 0 : index
    %c0_10 = arith.constant 0 : index
    %c0_11 = arith.constant 0 : index
    %13 = vector.load %arg5[%c0_9, %c0_10, %c0_11] : memref<4x1x128xbf16, #tpu.memory_space<vmem>>, vector<1x1x128xbf16>
    %14 = vector.shape_cast %13 : vector<1x1x128xbf16> to vector<1x128xbf16>
    %cst_12 = arith.constant dense<0.000000e+00> : vector<8x128xf32>
    %15 = tpu.matmul %10, %12, %cst_12 {dimension_numbers = #tpu.dot_dimension_numbers<[1], [0], [0], [1], [0, 0, 1, 1], [], []>} : vector<8x128xbf16>, vector<128x128xbf16>, vector<8x128xf32> -> vector<8x128xf32>
    %16 = arith.truncf %15 : vector<8x128xf32> to vector<8x128xbf16>
    %17 = vector.broadcast %14 : vector<1x128xbf16> to vector<8x128xbf16>
    %18 = arith.addf %16, %17 : vector<8x128xbf16>
    %cst_13 = arith.constant 1.000980e-02 : bf16
    %19 = vector.broadcast %cst_13 : bf16 to vector<8x128xbf16>
    %20 = arith.mulf %19, %18 : vector<8x128xbf16>
    %21 = arith.maximumf %18, %20 : vector<8x128xbf16>
    %22 = arith.addf %21, %10 : vector<8x128xbf16>
    %cst_14 = arith.constant 1.000980e-02 : bf16
    %23 = vector.broadcast %cst_14 : bf16 to vector<8x128xbf16>
    %24 = arith.mulf %23, %22 : vector<8x128xbf16>
    %25 = arith.maximumf %22, %24 : vector<8x128xbf16>
    %c1 = arith.constant 1 : index
    %c0_15 = arith.constant 0 : index
    %c0_16 = arith.constant 0 : index
    %26 = vector.load %arg4[%c1, %c0_15, %c0_16] : memref<4x128x128xbf16, #tpu.memory_space<vmem>>, vector<1x128x128xbf16>
    %27 = vector.shape_cast %26 : vector<1x128x128xbf16> to vector<128x128xbf16>
    %c1_17 = arith.constant 1 : index
    %c0_18 = arith.constant 0 : index
    %c0_19 = arith.constant 0 : index
    %28 = vector.load %arg5[%c1_17, %c0_18, %c0_19] : memref<4x1x128xbf16, #tpu.memory_space<vmem>>, vector<1x1x128xbf16>
    %29 = vector.shape_cast %28 : vector<1x1x128xbf16> to vector<1x128xbf16>
    %cst_20 = arith.constant dense<0.000000e+00> : vector<8x128xf32>
    %30 = tpu.matmul %25, %27, %cst_20 {dimension_numbers = #tpu.dot_dimension_numbers<[1], [0], [0], [1], [0, 0, 1, 1], [], []>} : vector<8x128xbf16>, vector<128x128xbf16>, vector<8x128xf32> -> vector<8x128xf32>
    %31 = arith.truncf %30 : vector<8x128xf32> to vector<8x128xbf16>
    %32 = vector.broadcast %29 : vector<1x128xbf16> to vector<8x128xbf16>
    %33 = arith.addf %31, %32 : vector<8x128xbf16>
    %cst_21 = arith.constant 1.000980e-02 : bf16
    %34 = vector.broadcast %cst_21 : bf16 to vector<8x128xbf16>
    %35 = arith.mulf %34, %33 : vector<8x128xbf16>
    %36 = arith.maximumf %33, %35 : vector<8x128xbf16>
    %37 = arith.addf %36, %25 : vector<8x128xbf16>
    %cst_22 = arith.constant 1.000980e-02 : bf16
    %38 = vector.broadcast %cst_22 : bf16 to vector<8x128xbf16>
    %39 = arith.mulf %38, %37 : vector<8x128xbf16>
    %40 = arith.maximumf %37, %39 : vector<8x128xbf16>
    %c2 = arith.constant 2 : index
    %c0_23 = arith.constant 0 : index
    %c0_24 = arith.constant 0 : index
    %41 = vector.load %arg4[%c2, %c0_23, %c0_24] : memref<4x128x128xbf16, #tpu.memory_space<vmem>>, vector<1x128x128xbf16>
    %42 = vector.shape_cast %41 : vector<1x128x128xbf16> to vector<128x128xbf16>
    %c2_25 = arith.constant 2 : index
    %c0_26 = arith.constant 0 : index
    %c0_27 = arith.constant 0 : index
    %43 = vector.load %arg5[%c2_25, %c0_26, %c0_27] : memref<4x1x128xbf16, #tpu.memory_space<vmem>>, vector<1x1x128xbf16>
    %44 = vector.shape_cast %43 : vector<1x1x128xbf16> to vector<1x128xbf16>
    %cst_28 = arith.constant dense<0.000000e+00> : vector<8x128xf32>
    %45 = tpu.matmul %40, %42, %cst_28 {dimension_numbers = #tpu.dot_dimension_numbers<[1], [0], [0], [1], [0, 0, 1, 1], [], []>} : vector<8x128xbf16>, vector<128x128xbf16>, vector<8x128xf32> -> vector<8x128xf32>
    %46 = arith.truncf %45 : vector<8x128xf32> to vector<8x128xbf16>
    %47 = vector.broadcast %44 : vector<1x128xbf16> to vector<8x128xbf16>
    %48 = arith.addf %46, %47 : vector<8x128xbf16>
    %cst_29 = arith.constant 1.000980e-02 : bf16
    %49 = vector.broadcast %cst_29 : bf16 to vector<8x128xbf16>
    %50 = arith.mulf %49, %48 : vector<8x128xbf16>
    %51 = arith.maximumf %48, %50 : vector<8x128xbf16>
    %52 = arith.addf %51, %40 : vector<8x128xbf16>
    %cst_30 = arith.constant 1.000980e-02 : bf16
    %53 = vector.broadcast %cst_30 : bf16 to vector<8x128xbf16>
    %54 = arith.mulf %53, %52 : vector<8x128xbf16>
    %55 = arith.maximumf %52, %54 : vector<8x128xbf16>
    %c3 = arith.constant 3 : index
    %c0_31 = arith.constant 0 : index
    %c0_32 = arith.constant 0 : index
    %56 = vector.load %arg4[%c3, %c0_31, %c0_32] : memref<4x128x128xbf16, #tpu.memory_space<vmem>>, vector<1x128x128xbf16>
    %57 = vector.shape_cast %56 : vector<1x128x128xbf16> to vector<128x128xbf16>
    %c3_33 = arith.constant 3 : index
    %c0_34 = arith.constant 0 : index
    %c0_35 = arith.constant 0 : index
    %58 = vector.load %arg5[%c3_33, %c0_34, %c0_35] : memref<4x1x128xbf16, #tpu.memory_space<vmem>>, vector<1x1x128xbf16>
    %59 = vector.shape_cast %58 : vector<1x1x128xbf16> to vector<1x128xbf16>
    %cst_36 = arith.constant dense<0.000000e+00> : vector<8x128xf32>
    %60 = tpu.matmul %55, %57, %cst_36 {dimension_numbers = #tpu.dot_dimension_numbers<[1], [0], [0], [1], [0, 0, 1, 1], [], []>} : vector<8x128xbf16>, vector<128x128xbf16>, vector<8x128xf32> -> vector<8x128xf32>
    %61 = arith.truncf %60 : vector<8x128xf32> to vector<8x128xbf16>
    %62 = vector.broadcast %59 : vector<1x128xbf16> to vector<8x128xbf16>
    %63 = arith.addf %61, %62 : vector<8x128xbf16>
    %cst_37 = arith.constant 1.000980e-02 : bf16
    %64 = vector.broadcast %cst_37 : bf16 to vector<8x128xbf16>
    %65 = arith.mulf %64, %63 : vector<8x128xbf16>
    %66 = arith.maximumf %63, %65 : vector<8x128xbf16>
    %67 = arith.addf %66, %55 : vector<8x128xbf16>
    %cst_38 = arith.constant 1.000980e-02 : bf16
    %68 = vector.broadcast %cst_38 : bf16 to vector<8x128xbf16>
    %69 = arith.mulf %68, %67 : vector<8x128xbf16>
    %70 = arith.maximumf %67, %69 : vector<8x128xbf16>
    %c0_39 = arith.constant 0 : index
    %c0_40 = arith.constant 0 : index
    %71 = vector.load %arg6[%c0_39, %c0_40] : memref<128x128xbf16, #tpu.memory_space<vmem>>, vector<128x128xbf16>
    %c0_41 = arith.constant 0 : index
    %c0_42 = arith.constant 0 : index
    %72 = vector.load %arg7[%c0_41, %c0_42] : memref<1x128xbf16, #tpu.memory_space<vmem>>, vector<1x128xbf16>
    %cst_43 = arith.constant dense<0.000000e+00> : vector<8x128xf32>
    %73 = tpu.matmul %70, %71, %cst_43 {dimension_numbers = #tpu.dot_dimension_numbers<[1], [0], [0], [1], [0, 0, 1, 1], [], []>} : vector<8x128xbf16>, vector<128x128xbf16>, vector<8x128xf32> -> vector<8x128xf32>
    %74 = arith.truncf %73 : vector<8x128xf32> to vector<8x128xbf16>
    %75 = vector.broadcast %72 : vector<1x128xbf16> to vector<8x128xbf16>
    %76 = arith.addf %74, %75 : vector<8x128xbf16>
    %c0_44 = arith.constant 0 : index
    %c0_45 = arith.constant 0 : index
    %77 = vector.load %arg17[%c0_44, %c0_45] : memref<8x128xbf16, #tpu.memory_space<vmem>>, vector<8x128xbf16>
    tpu.vector_store %arg17[%c0_44, %c0_45], %76 {strides = array<i32>} : memref<8x128xbf16, #tpu.memory_space<vmem>>, vector<8x128xbf16>,
    %c0_46 = arith.constant 0 : index
    %c0_47 = arith.constant 0 : index
    %78 = vector.load %arg17[%c0_46, %c0_47] : memref<8x128xbf16, #tpu.memory_space<vmem>>, vector<8x128xbf16>
    %c0_48 = arith.constant 0 : index
    %c0_49 = arith.constant 0 : index
    %79 = vector.load %arg8[%c0_48, %c0_49] : memref<128x384xbf16, #tpu.memory_space<vmem>>, vector<128x384xbf16>
    %c0_50 = arith.constant 0 : index
    %c0_51 = arith.constant 0 : index
    %80 = vector.load %arg9[%c0_50, %c0_51] : memref<1x384xbf16, #tpu.memory_space<vmem>>, vector<1x384xbf16>
    %cst_52 = arith.constant dense<0.000000e+00> : vector<8x384xf32>
    %81 = tpu.matmul %78, %79, %cst_52 {dimension_numbers = #tpu.dot_dimension_numbers<[1], [0], [0], [1], [0, 0, 1, 1], [], []>} : vector<8x128xbf16>, vector<128x384xbf16>, vector<8x384xf32> -> vector<8x384xf32>
    %82 = arith.truncf %81 : vector<8x384xf32> to vector<8x384xbf16>
    %83 = vector.broadcast %80 : vector<1x384xbf16> to vector<8x384xbf16>
    %84 = arith.addf %82, %83 : vector<8x384xbf16>
    %cst_53 = arith.constant 1.000980e-02 : bf16
    %85 = vector.broadcast %cst_53 : bf16 to vector<8x384xbf16>
    %86 = arith.mulf %85, %84 : vector<8x384xbf16>
    %87 = arith.maximumf %84, %86 : vector<8x384xbf16>
    %88 = vector.extract_strided_slice %87 {offsets = [0, 0], sizes = [8, 128], strides = [1, 1]} : vector<8x384xbf16> to vector<8x128xbf16>
    %89 = arith.addf %88, %78 : vector<8x128xbf16>
    %cst_54 = arith.constant 1.000980e-02 : bf16
    %90 = vector.broadcast %cst_54 : bf16 to vector<8x128xbf16>
    %91 = arith.mulf %90, %89 : vector<8x128xbf16>
    %92 = arith.maximumf %89, %91 : vector<8x128xbf16>
    %93 = vector.extract_strided_slice %87 {offsets = [0, 128], sizes = [8, 128], strides = [1, 1]} : vector<8x384xbf16> to vector<8x128xbf16>
    %94 = arith.addf %93, %78 : vector<8x128xbf16>
    %cst_55 = arith.constant 1.000980e-02 : bf16
    %95 = vector.broadcast %cst_55 : bf16 to vector<8x128xbf16>
    %96 = arith.mulf %95, %94 : vector<8x128xbf16>
    %97 = arith.maximumf %94, %96 : vector<8x128xbf16>
    %98 = vector.extract_strided_slice %87 {offsets = [0, 256], sizes = [8, 128], strides = [1, 1]} : vector<8x384xbf16> to vector<8x128xbf16>
    %99 = arith.addf %98, %78 : vector<8x128xbf16>
    %cst_56 = arith.constant 1.000980e-02 : bf16
    %100 = vector.broadcast %cst_56 : bf16 to vector<8x128xbf16>
    %101 = arith.mulf %100, %99 : vector<8x128xbf16>
    %102 = arith.maximumf %99, %101 : vector<8x128xbf16>
    %c0_57 = arith.constant 0 : index
    %c0_58 = arith.constant 0 : index
    %c0_59 = arith.constant 0 : index
    %103 = vector.load %arg10[%c0_57, %c0_58, %c0_59] : memref<3x128x128xbf16, #tpu.memory_space<vmem>>, vector<1x128x128xbf16>
    %104 = vector.shape_cast %103 : vector<1x128x128xbf16> to vector<128x128xbf16>
    %c0_60 = arith.constant 0 : index
    %c0_61 = arith.constant 0 : index
    %c0_62 = arith.constant 0 : index
    %105 = vector.load %arg11[%c0_60, %c0_61, %c0_62] : memref<3x1x128xbf16, #tpu.memory_space<vmem>>, vector<1x1x128xbf16>
    %106 = vector.shape_cast %105 : vector<1x1x128xbf16> to vector<1x128xbf16>
    %cst_63 = arith.constant dense<0.000000e+00> : vector<8x128xf32>
    %107 = tpu.matmul %92, %104, %cst_63 {dimension_numbers = #tpu.dot_dimension_numbers<[1], [0], [0], [1], [0, 0, 1, 1], [], []>} : vector<8x128xbf16>, vector<128x128xbf16>, vector<8x128xf32> -> vector<8x128xf32>
    %108 = arith.truncf %107 : vector<8x128xf32> to vector<8x128xbf16>
    %109 = vector.broadcast %106 : vector<1x128xbf16> to vector<8x128xbf16>
    %110 = arith.addf %108, %109 : vector<8x128xbf16>
    %cst_64 = arith.constant 1.000980e-02 : bf16
    %111 = vector.broadcast %cst_64 : bf16 to vector<8x128xbf16>
    %112 = arith.mulf %111, %110 : vector<8x128xbf16>
    %113 = arith.maximumf %110, %112 : vector<8x128xbf16>
    %114 = arith.addf %113, %92 : vector<8x128xbf16>
    %cst_65 = arith.constant 1.000980e-02 : bf16
    %115 = vector.broadcast %cst_65 : bf16 to vector<8x128xbf16>
    %116 = arith.mulf %115, %114 : vector<8x128xbf16>
    %117 = arith.maximumf %114, %116 : vector<8x128xbf16>
    %c1_66 = arith.constant 1 : index
    %c0_67 = arith.constant 0 : index
    %c0_68 = arith.constant 0 : index
    %118 = vector.load %arg10[%c1_66, %c0_67, %c0_68] : memref<3x128x128xbf16, #tpu.memory_space<vmem>>, vector<1x128x128xbf16>
    %119 = vector.shape_cast %118 : vector<1x128x128xbf16> to vector<128x128xbf16>
    %c1_69 = arith.constant 1 : index
    %c0_70 = arith.constant 0 : index
    %c0_71 = arith.constant 0 : index
    %120 = vector.load %arg11[%c1_69, %c0_70, %c0_71] : memref<3x1x128xbf16, #tpu.memory_space<vmem>>, vector<1x1x128xbf16>
    %121 = vector.shape_cast %120 : vector<1x1x128xbf16> to vector<1x128xbf16>
    %cst_72 = arith.constant dense<0.000000e+00> : vector<8x128xf32>
    %122 = tpu.matmul %97, %119, %cst_72 {dimension_numbers = #tpu.dot_dimension_numbers<[1], [0], [0], [1], [0, 0, 1, 1], [], []>} : vector<8x128xbf16>, vector<128x128xbf16>, vector<8x128xf32> -> vector<8x128xf32>
    %123 = arith.truncf %122 : vector<8x128xf32> to vector<8x128xbf16>
    %124 = vector.broadcast %121 : vector<1x128xbf16> to vector<8x128xbf16>
    %125 = arith.addf %123, %124 : vector<8x128xbf16>
    %cst_73 = arith.constant 1.000980e-02 : bf16
    %126 = vector.broadcast %cst_73 : bf16 to vector<8x128xbf16>
    %127 = arith.mulf %126, %125 : vector<8x128xbf16>
    %128 = arith.maximumf %125, %127 : vector<8x128xbf16>
    %129 = arith.addf %128, %97 : vector<8x128xbf16>
    %cst_74 = arith.constant 1.000980e-02 : bf16
    %130 = vector.broadcast %cst_74 : bf16 to vector<8x128xbf16>
    %131 = arith.mulf %130, %129 : vector<8x128xbf16>
    %132 = arith.maximumf %129, %131 : vector<8x128xbf16>
    %c2_75 = arith.constant 2 : index
    %c0_76 = arith.constant 0 : index
    %c0_77 = arith.constant 0 : index
    %133 = vector.load %arg10[%c2_75, %c0_76, %c0_77] : memref<3x128x128xbf16, #tpu.memory_space<vmem>>, vector<1x128x128xbf16>
    %134 = vector.shape_cast %133 : vector<1x128x128xbf16> to vector<128x128xbf16>
    %c2_78 = arith.constant 2 : index
    %c0_79 = arith.constant 0 : index
    %c0_80 = arith.constant 0 : index
    %135 = vector.load %arg11[%c2_78, %c0_79, %c0_80] : memref<3x1x128xbf16, #tpu.memory_space<vmem>>, vector<1x1x128xbf16>
    %136 = vector.shape_cast %135 : vector<1x1x128xbf16> to vector<1x128xbf16>
    %cst_81 = arith.constant dense<0.000000e+00> : vector<8x128xf32>
    %137 = tpu.matmul %102, %134, %cst_81 {dimension_numbers = #tpu.dot_dimension_numbers<[1], [0], [0], [1], [0, 0, 1, 1], [], []>} : vector<8x128xbf16>, vector<128x128xbf16>, vector<8x128xf32> -> vector<8x128xf32>
    %138 = arith.truncf %137 : vector<8x128xf32> to vector<8x128xbf16>
    %139 = vector.broadcast %136 : vector<1x128xbf16> to vector<8x128xbf16>
    %140 = arith.addf %138, %139 : vector<8x128xbf16>
    %cst_82 = arith.constant 1.000980e-02 : bf16
    %141 = vector.broadcast %cst_82 : bf16 to vector<8x128xbf16>
    %142 = arith.mulf %141, %140 : vector<8x128xbf16>
    %143 = arith.maximumf %140, %142 : vector<8x128xbf16>
    %144 = arith.addf %143, %102 : vector<8x128xbf16>
    %cst_83 = arith.constant 1.000980e-02 : bf16
    %145 = vector.broadcast %cst_83 : bf16 to vector<8x128xbf16>
    %146 = arith.mulf %145, %144 : vector<8x128xbf16>
    %147 = arith.maximumf %144, %146 : vector<8x128xbf16>
    %c0_84 = arith.constant 0 : index
    %c0_85 = arith.constant 0 : index
    %148 = vector.load %arg12[%c0_84, %c0_85] : memref<128x128xbf16, #tpu.memory_space<vmem>>, vector<128x128xbf16>
    %cst_86 = arith.constant dense<0.000000e+00> : vector<8x128xf32>
    %149 = tpu.matmul %117, %148, %cst_86 {dimension_numbers = #tpu.dot_dimension_numbers<[1], [0], [0], [1], [0, 0, 1, 1], [], []>} : vector<8x128xbf16>, vector<128x128xbf16>, vector<8x128xf32> -> vector<8x128xf32>
    %c0_87 = arith.constant 0 : index
    %c0_88 = arith.constant 0 : index
    %150 = vector.load %arg13[%c0_87, %c0_88] : memref<128x128xbf16, #tpu.memory_space<vmem>>, vector<128x128xbf16>
    %cst_89 = arith.constant dense<0.000000e+00> : vector<8x128xf32>
    %151 = tpu.matmul %132, %150, %cst_89 {dimension_numbers = #tpu.dot_dimension_numbers<[1], [0], [0], [1], [0, 0, 1, 1], [], []>} : vector<8x128xbf16>, vector<128x128xbf16>, vector<8x128xf32> -> vector<8x128xf32>
    %152 = arith.addf %149, %151 : vector<8x128xf32>
    %c0_90 = arith.constant 0 : index
    %c0_91 = arith.constant 0 : index
    %153 = vector.load %arg14[%c0_90, %c0_91] : memref<128x128xbf16, #tpu.memory_space<vmem>>, vector<128x128xbf16>
    %cst_92 = arith.constant dense<0.000000e+00> : vector<8x128xf32>
    %154 = tpu.matmul %147, %153, %cst_92 {dimension_numbers = #tpu.dot_dimension_numbers<[1], [0], [0], [1], [0, 0, 1, 1], [], []>} : vector<8x128xbf16>, vector<128x128xbf16>, vector<8x128xf32> -> vector<8x128xf32>
    %155 = arith.addf %152, %154 : vector<8x128xf32>
    %c0_93 = arith.constant 0 : index
    %c0_94 = arith.constant 0 : index
    %156 = vector.load %arg15[%c0_93, %c0_94] : memref<1x128xf32, #tpu.memory_space<vmem>>, vector<1x128xf32>
    %157 = vector.broadcast %156 : vector<1x128xf32> to vector<8x128xf32>
    %158 = arith.addf %155, %157 : vector<8x128xf32>
    %159 = tpu.iota {dimensions = array<i32: 1>} : vector<8x128xi32>
    %160 = math.tanh %158 : vector<8x128xf32>
    %cst_95 = arith.constant 5.000000e+00 : f32
    %161 = vector.broadcast %cst_95 : f32 to vector<8x128xf32>
    %162 = arith.mulf %161, %158 : vector<8x128xf32>
    %cst_96 = arith.constant 2.000000e+01 : f32
    %163 = vector.broadcast %cst_96 : f32 to vector<8x128xf32>
    %164 = arith.cmpf ogt, %162, %163 : vector<8x128xf32>
    %165 = math.exp %162 : vector<8x128xf32>
    %166 = math.log1p %165 : vector<8x128xf32>
    %cst_97 = arith.constant 5.000000e+00 : f32
    %167 = vector.broadcast %cst_97 : f32 to vector<8x128xf32>
    %168 = arith.divf %166, %167 : vector<8x128xf32>
    %169 = arith.select %164, %158, %168 : vector<8x128xi1>, vector<8x128xf32>
    %c8_i32 = arith.constant 8 : i32
    %170 = vector.broadcast %c8_i32 : i32 to vector<8x128xi32>
    %171 = arith.cmpi slt, %159, %170 : vector<8x128xi32>
    %c12_i32 = arith.constant 12 : i32
    %172 = vector.broadcast %c12_i32 : i32 to vector<8x128xi32>
    %173 = arith.cmpi slt, %159, %172 : vector<8x128xi32>
    %174 = arith.select %173, %158, %169 : vector<8x128xi1>, vector<8x128xf32>
    %175 = arith.select %171, %160, %174 : vector<8x128xi1>, vector<8x128xf32>
    %c0_98 = arith.constant 0 : index
    %c0_99 = arith.constant 0 : index
    %176 = vector.load %arg16[%c0_98, %c0_99] : memref<8x128xf32, #tpu.memory_space<vmem>>, vector<8x128xf32>
    tpu.vector_store %arg16[%c0_98, %c0_99], %175 {strides = array<i32>} : memref<8x128xf32, #tpu.memory_space<vmem>>, vector<8x128xf32>,
    return
  }
  func.func @transform_0(%arg0: i32) -> (i32, i32) {
    %c0_i32 = arith.constant 0 : i32
    %c0_i32_0 = arith.constant 0 : i32
    return %arg0, %c0_i32 : i32, i32
  }
  func.func @transform_1(%arg0: i32) -> (i32, i32) {
    %c0_i32 = arith.constant 0 : i32
    %c0_i32_0 = arith.constant 0 : i32
    %c0_i32_1 = arith.constant 0 : i32
    return %c0_i32, %c0_i32_0 : i32, i32
  }
  func.func @transform_2(%arg0: i32) -> (i32, i32) {
    %c0_i32 = arith.constant 0 : i32
    %c0_i32_0 = arith.constant 0 : i32
    %c0_i32_1 = arith.constant 0 : i32
    return %c0_i32, %c0_i32_0 : i32, i32
  }
  func.func @transform_3(%arg0: i32) -> (i32, i32, i32) {
    %c0_i32 = arith.constant 0 : i32
    %c0_i32_0 = arith.constant 0 : i32
    %c0_i32_1 = arith.constant 0 : i32
    %c0_i32_2 = arith.constant 0 : i32
    return %c0_i32, %c0_i32_0, %c0_i32_1 : i32, i32, i32
  }
  func.func @transform_4(%arg0: i32) -> (i32, i32, i32) {
    %c0_i32 = arith.constant 0 : i32
    %c0_i32_0 = arith.constant 0 : i32
    %c0_i32_1 = arith.constant 0 : i32
    %c0_i32_2 = arith.constant 0 : i32
    return %c0_i32, %c0_i32_0, %c0_i32_1 : i32, i32, i32
  }
  func.func @transform_5(%arg0: i32) -> (i32, i32) {
    %c0_i32 = arith.constant 0 : i32
    %c0_i32_0 = arith.constant 0 : i32
    %c0_i32_1 = arith.constant 0 : i32
    return %c0_i32, %c0_i32_0 : i32, i32
  }
  func.func @transform_6(%arg0: i32) -> (i32, i32) {
    %c0_i32 = arith.constant 0 : i32
    %c0_i32_0 = arith.constant 0 : i32
    %c0_i32_1 = arith.constant 0 : i32
    return %c0_i32, %c0_i32_0 : i32, i32
  }
  func.func @transform_7(%arg0: i32) -> (i32, i32) {
    %c0_i32 = arith.constant 0 : i32
    %c0_i32_0 = arith.constant 0 : i32
    %c0_i32_1 = arith.constant 0 : i32
    return %c0_i32, %c0_i32_0 : i32, i32
  }
  func.func @transform_8(%arg0: i32) -> (i32, i32) {
    %c0_i32 = arith.constant 0 : i32
    %c0_i32_0 = arith.constant 0 : i32
    %c0_i32_1 = arith.constant 0 : i32
    return %c0_i32, %c0_i32_0 : i32, i32
  }
  func.func @transform_9(%arg0: i32) -> (i32, i32, i32) {
    %c0_i32 = arith.constant 0 : i32
    %c0_i32_0 = arith.constant 0 : i32
    %c0_i32_1 = arith.constant 0 : i32
    %c0_i32_2 = arith.constant 0 : i32
    return %c0_i32, %c0_i32_0, %c0_i32_1 : i32, i32, i32
  }
  func.func @transform_10(%arg0: i32) -> (i32, i32, i32) {
    %c0_i32 = arith.constant 0 : i32
    %c0_i32_0 = arith.constant 0 : i32
    %c0_i32_1 = arith.constant 0 : i32
    %c0_i32_2 = arith.constant 0 : i32
    return %c0_i32, %c0_i32_0, %c0_i32_1 : i32, i32, i32
  }
  func.func @transform_11(%arg0: i32) -> (i32, i32) {
    %c0_i32 = arith.constant 0 : i32
    %c0_i32_0 = arith.constant 0 : i32
    %c0_i32_1 = arith.constant 0 : i32
    return %c0_i32, %c0_i32_0 : i32, i32
  }
  func.func @transform_12(%arg0: i32) -> (i32, i32) {
    %c0_i32 = arith.constant 0 : i32
    %c0_i32_0 = arith.constant 0 : i32
    %c0_i32_1 = arith.constant 0 : i32
    return %c0_i32, %c0_i32_0 : i32, i32
  }
  func.func @transform_13(%arg0: i32) -> (i32, i32) {
    %c0_i32 = arith.constant 0 : i32
    %c0_i32_0 = arith.constant 0 : i32
    %c0_i32_1 = arith.constant 0 : i32
    return %c0_i32, %c0_i32_0 : i32, i32
  }
  func.func @transform_14(%arg0: i32) -> (i32, i32) {
    %c0_i32 = arith.constant 0 : i32
    %c0_i32_0 = arith.constant 0 : i32
    %c0_i32_1 = arith.constant 0 : i32
    return %c0_i32, %c0_i32_0 : i32, i32
  }
  func.func @transform_15(%arg0: i32) -> (i32, i32) {
    %c0_i32 = arith.constant 0 : i32
    %c0_i32_0 = arith.constant 0 : i32
    return %arg0, %c0_i32 : i32, i32
  }
}

</mosaic_0001>

<bundles_post_ra>
// kernel: kktnn_forward.1
= control target key start
LH: loop header
LB: loop body
LE: loop exit
PB: predicated region body
PF: predicated region fallthrough
CT: control target
= control target key end

     0   :  { %v2422_v0 = vmov 0.0   ;;  %vm2423_vm0 = vmmov 0   ;;  %vm63_vm1 = vcmask 130048   ;;  %v111_v16 = vlaneseq  ;;  %s3046_s1 = inlined_call_operand.vmem [shape: bf16[16,128], index: 1, kind: input, shape index: {}]   ;;  %s3047_s0 = inlined_call_operand.vmem [shape: f32[8,16], index: 0, kind: input, shape index: {}]   ;;  %s3048_s3 = inlined_call_operand.vmem [shape: bf16[4,128,128], index: 3, kind: input, shape index: {}]   ;;  %s3049_s2 = inlined_call_operand.vmem [shape: bf16[1,128], index: 2, kind: input, shape index: {}]   ;;  %s3050_s4 = inlined_call_operand.vmem [shape: bf16[4,1,128], index: 4, kind: input, shape index: {}]   ;;  %s3051_s5 = inlined_call_operand.vmem [shape: bf16[128,128], index: 5, kind: input, shape index: {}]   ;;  %s3052_s7 = inlined_call_operand.vmem [shape: bf16[128,384], index: 7, kind: input, shape index: {}]   ;;  %s3053_s9 = inlined_call_operand.vmem [shape: bf16[3,128,128], index: 9, kind: input, shape index: {}]   ;;  %s3054_s6 = inlined_call_operand.vmem [shape: bf16[1,128], index: 6, kind: input, shape index: {}]   ;;  %s3055_s12 = inlined_call_operand.vmem [shape: bf16[128,128], index: 12, kind: input, shape index: {}]   ;;  %s3056_s11 = inlined_call_operand.vmem [shape: bf16[128,128], index: 11, kind: input, shape index: {}]   ;;  %s3057_s8 = inlined_call_operand.vmem [shape: bf16[1,384], index: 8, kind: input, shape index: {}]   ;;  %s3058_s13 = inlined_call_operand.vmem [shape: bf16[128,128], index: 13, kind: input, shape index: {}]   ;;  %s3059_s10 = inlined_call_operand.vmem [shape: bf16[3,1,128], index: 10, kind: input, shape index: {}]   ;;  %s3060_s14 = inlined_call_operand.vmem [shape: f32[1,128], index: 14, kind: input, shape index: {}]   ;;  %s3061_s15 = inlined_call_operand.vmem [shape: f32[8,128], index: 15, kind: output, shape index: {}]  }
   0x1   :  { %2045 = vmatprep.subr.bf16.mxu0 %v2422_v0  ;;  %v2295_v1 = vld [vmem:[%s3046_s1] sm:$0xff]   ;;  %2047 = vmatprep.mubr.msk.bf16.mxu0 %vm2423_vm0, %v2422_v0  ;;  %v2297_v5 = vld [vmem:[%s3048_s3 + $0x8] sm:$0xff]   ;;  %v2298_v6 = vld [vmem:[%s3048_s3 + $0x10] sm:$0xff]  }
   0x2   :  { %v52_v2 = vld [vmem:[%s3047_s0] sm:$0xff]  ;;  %2051 = vmatprep.subr.bf16.mxu1 %v2422_v0  ;;  %2067 = vmatprep.mubr.msk.bf16.mxu1 %vm2423_vm0, %v2422_v0  ;;  %v2299_v7 = vld [vmem:[%s3048_s3 + $0x18] sm:$0xff]   ;;  %v2301_v9 = vld [vmem:[%s3048_s3 + $0x28] sm:$0xff]   ;;  %v2570_v17 = vshrl.u32 %v111_v16, 7 }
   0x3   :  { %2046 = vmatpush3.bf16.msra.mxu0 %v2295_v1  ;;  %v53_v3 = vpack.c.bf16 %v52_v2, %v52_v2  ;;  %v2296_v4 = vld [vmem:[%s3048_s3] sm:$0xff]   ;;  %v2302_v10 = vld [vmem:[%s3048_s3 + $0x30] sm:$0xff]   ;;  %v2303_v11 = vld [vmem:[%s3048_s3 + $0x38] sm:$0xff]  }
   0x4   :  { %2071 = vmatprep.subr.bf16.mxu0 %v2422_v0  ;;  %2052 = vmatpush3.bf16.msra.mxu1 %v2296_v4  ;;  %v2300_v8 = vld [vmem:[%s3048_s3 + $0x20] sm:$0xff]   ;;  %v2305_v13 = vld [vmem:[%s3048_s3 + $0x48] sm:$0xff]   ;;  %v2306_v14 = vld [vmem:[%s3048_s3 + $0x50] sm:$0xff]   ;;  %v2576_v20 = vsub.s32 0, %v2570_v17 }
   0x5   :  { %2053 = vmatprep.subr.bf16.mxu1 %v2422_v0  ;;  %v2304_v12 = vld [vmem:[%s3048_s3 + $0x40] sm:$0xff]   ;;  %v2307_v15 = vld [vmem:[%s3048_s3 + $0x58] sm:$0xff]   ;;  %v2309_v31 = vld [vmem:[%s3048_s3 + $0x68] sm:$0xff]  }
   0x6   :  { %2048 = vmatmul.mubr.msk.bf16.vlgmr.msra.gmra.mrb[0].mxu0 %vm63_vm1, %v53_v3  ;;  %v56_v18 = vld [vmem:[%s3049_s2] sm:$0x1]  ;;  %v2310_v32 = vld [vmem:[%s3048_s3 + $0x70] sm:$0xff]   ;;  %v2311_v33 = vld [vmem:[%s3048_s3 + $0x78] sm:$0xff]  }
   0x7   :  { %2087 = vmatprep.mubr.msk.bf16.mxu0 %vm2423_vm0, %v2422_v0  ;;  %2072 = vmatpush3.bf16.msra.mxu0 %v2304_v12  ;;  %v109_v19 = vpack.i.b16 %v56_v18, %v56_v18  ;;  %v2308_v30 = vld [vmem:[%s3048_s3 + $0x60] sm:$0xff]   ;;  %v2313_v35 = vld [vmem:[%s3048_s3 + $0x88] sm:$0xff]   ;;  %v2314_v36 = vld [vmem:[%s3048_s3 + $0x90] sm:$0xff]  }
   0x8   :  { %2054 = vmatpush3.bf16.msra.mxu1 %v2297_v5  ;;  %2073 = vmatprep.subr.bf16.mxu0 %v2422_v0  ;;  %v2312_v34 = vld [vmem:[%s3048_s3 + $0x80] sm:$0xff]   ;;  %v2315_v37 = vld [vmem:[%s3048_s3 + $0x98] sm:$0xff]   ;;  %v2317_v53 = vld [vmem:[%s3048_s3 + $0xa8] sm:$0xff]  }
   0x9   :  { %2055 = vmatprep.subr.bf16.mxu1 %v2422_v0  ;;  %v114_v21 = vrot.slane %v109_v19, %v2576_v20  ;;  %v134_v38 = vld [vmem:[%s3050_s4] sm:$0x1]  ;;  %v2318_v54 = vld [vmem:[%s3048_s3 + $0xb0] sm:$0xff]   ;;  %v2319_v55 = vld [vmem:[%s3048_s3 + $0xb8] sm:$0xff]  }
   0xa   :  { %v225_v39 = vpack.i.b16 %v134_v38, %v134_v38  ;;  %v2316_v52 = vld [vmem:[%s3048_s3 + $0xa0] sm:$0xff]   ;;  %v2321_v57 = vld [vmem:[%s3048_s3 + $0xc8] sm:$0xff]   ;;  %v2322_v58 = vld [vmem:[%s3048_s3 + $0xd0] sm:$0xff]  }
   0xb   :  { %2074 = vmatpush3.bf16.msra.mxu0 %v2305_v13  ;;  %v2320_v56 = vld [vmem:[%s3048_s3 + $0xc0] sm:$0xff]   ;;  %v2323_v59 = vld [vmem:[%s3048_s3 + $0xd8] sm:$0xff]   ;;  %v2325_v12 = vld [vmem:[%s3048_s3 + $0xe8] sm:$0xff]  }
   0xc   :  { %2056 = vmatpush3.bf16.msra.mxu1 %v2298_v6  ;;  %2075 = vmatprep.subr.bf16.mxu0 %v2422_v0  ;;  %v230_v40 = vrot.slane %v225_v39, %v2576_v20  ;;  %v1760_v60 = vld [vmem:[%s3050_s4 + $0x1] sm:$0x1]  ;;  %v2326_v13 = vld [vmem:[%s3048_s3 + $0xf0] sm:$0xff]   ;;  %v2329_v18 = vld [vmem:[%s3051_s5 + $0x8] sm:$0xff]  }
   0xd   :  { %2057 = vmatprep.subr.bf16.mxu1 %v2422_v0  ;;  %v346_v61 = vpack.i.b16 %v1760_v60, %v1760_v60  ;;  %v2330_v19 = vld [vmem:[%s3051_s5 + $0x10] sm:$0xff]   ;;  %v2335_v39 = vld [vmem:[%s3051_s5 + $0x38] sm:$0xff]  }
   0xe   :  { %v2334_v38 = vld [vmem:[%s3051_s5 + $0x30] sm:$0xff]  }
   0xf   :  { %2076 = vmatpush3.bf16.msra.mxu0 %v2306_v14  ;;  %v351_v62 = vrot.slane %v346_v61, %v2576_v20  ;;  %v2327_v14 = vld [vmem:[%s3048_s3 + $0xf8] sm:$0xff]  }
  0x10   :  { %2058 = vmatpush3.bf16.msra.mxu1 %v2299_v7  ;;  %2077 = vmatprep.subr.bf16.mxu0 %v2422_v0 }
  0x11   :  { %2059 = vmatprep.subr.bf16.mxu1 %v2422_v0 }
  0x13   :  { %2078 = vmatpush3.bf16.msra.mxu0 %v2307_v15  ;;  %v2328_v15 = vld [vmem:[%s3051_s5] sm:$0xff]  }
  0x14   :  { %2060 = vmatpush3.bf16.msra.mxu1 %v2300_v8  ;;  %2079 = vmatprep.subr.bf16.mxu0 %v2422_v0 }
  0x15   :  { %2061 = vmatprep.subr.bf16.mxu1 %v2422_v0 }
  0x17   :  { %2080 = vmatpush3.bf16.msra.mxu0 %v2308_v30 }
  0x18   :  { %2062 = vmatpush3.bf16.msra.mxu1 %v2301_v9  ;;  %2081 = vmatprep.subr.bf16.mxu0 %v2422_v0 }
  0x19   :  { %2063 = vmatprep.subr.bf16.mxu1 %v2422_v0 }
  0x1b   :  { %2082 = vmatpush3.bf16.msra.mxu0 %v2309_v31 }
  0x1c   :  { %2064 = vmatpush3.bf16.msra.mxu1 %v2302_v10  ;;  %2083 = vmatprep.subr.bf16.mxu0 %v2422_v0 }
  0x1d   :  { %2065 = vmatprep.subr.bf16.mxu1 %v2422_v0 }
  0x1f   :  { %2084 = vmatpush3.bf16.msra.mxu0 %v2310_v32 }
  0x20   :  { %2066 = vmatpush3.bf16.msra.mxu1 %v2303_v11  ;;  %2085 = vmatprep.subr.bf16.mxu0 %v2422_v0  ;;  %v2324_v11 = vld [vmem:[%s3048_s3 + $0xe0] sm:$0xff]  }
  0x21   :  { %2091 = vmatprep.subr.bf16.mxu1 %v2422_v0 }
  0x23   :  { %2086 = vmatpush3.bf16.msra.mxu0 %v2311_v33 }
  0x24   :  { %2111 = vmatprep.subr.bf16.mxu0 %v2422_v0 }
  0xd9   :  { %v101_v22 = vpop.f32.mrb[0].mxu0 }
  0xda   :  { %v107_v23 = vpack.c.bf16 %v101_v22, %v101_v22  ;;  %v2049_v24 = vpop.f32.mrb[1].mxu0  ;;  %v1785_v22 = vld [vmem:[%s3050_s4 + $0x2] sm:$0x1] }
  0xdb   :  { %v104_v25 = vpop.f32.mrb[2].mxu0 }
  0xdc   :  { %v115_v26 = vadd.bf16 %v114_v21, %v107_v23  ;;  %v2050_v27 = vpop.f32.mrb[3].mxu0  ;;  %v2331_v21 = vld [vmem:[%s3051_s5 + $0x18] sm:$0xff]   ;;  %v467_v23 = vpack.i.b16 %v1785_v22, %v1785_v22 }
  0xde   :  { %v116_v28 = vmul.bf16 1009007652, %v115_v26  ;;  %v472_v24 = vrot.slane %v467_v23, %v2576_v20 }
  0xe0   :  { %v117_v29 = vmax.bf16 %v116_v28, %v115_v26 }
  0xe2   :  { %2068 = vmatmul.mubr.bf16.vlgmr.msra.gmra.mrb[0].mxu1 %v117_v29 }
  0xe3   :  { %2107 = vmatprep.mubr.msk.bf16.mxu1 %vm2423_vm0, %v2422_v0  ;;  %2092 = vmatpush3.bf16.msra.mxu1 %v2312_v34 }
  0xe4   :  { %2093 = vmatprep.subr.bf16.mxu1 %v2422_v0 }
  0xe7   :  { %2094 = vmatpush3.bf16.msra.mxu1 %v2313_v35 }
  0xe8   :  { %2095 = vmatprep.subr.bf16.mxu1 %v2422_v0 }
  0xeb   :  { %2096 = vmatpush3.bf16.msra.mxu1 %v2314_v36  ;;  %v2332_v36 = vld [vmem:[%s3051_s5 + $0x20] sm:$0xff]  }
  0xec   :  { %2097 = vmatprep.subr.bf16.mxu1 %v2422_v0 }
  0xef   :  { %2098 = vmatpush3.bf16.msra.mxu1 %v2315_v37  ;;  %v2333_v37 = vld [vmem:[%s3051_s5 + $0x28] sm:$0xff]  }
  0xf0   :  { %2099 = vmatprep.subr.bf16.mxu1 %v2422_v0 }
  0xf3   :  { %2100 = vmatpush3.bf16.msra.mxu1 %v2316_v52 }
  0xf4   :  { %2101 = vmatprep.subr.bf16.mxu1 %v2422_v0 }
  0xf7   :  { %2102 = vmatpush3.bf16.msra.mxu1 %v2317_v53 }
  0xf8   :  { %2103 = vmatprep.subr.bf16.mxu1 %v2422_v0 }
  0xfb   :  { %2104 = vmatpush3.bf16.msra.mxu1 %v2318_v54 }
  0xfc   :  { %2105 = vmatprep.subr.bf16.mxu1 %v2422_v0 }
  0xff   :  { %2106 = vmatpush3.bf16.msra.mxu1 %v2319_v55 }
 0x100   :  { %2131 = vmatprep.subr.bf16.mxu1 %v2422_v0 }
 0x1b5   :  { %v217_v41 = vpop.f32.mrb[0].mxu1 }
 0x1b6   :  { %v223_v42 = vpack.c.bf16 %v217_v41, %v217_v41  ;;  %v2069_v43 = vpop.f32.mrb[1].mxu1  ;;  %v2338_v41 = vld [vmem:[%s3052_s7 + $0x4] ss:$12 sps:$4 sm:$0xff]  }
 0x1b7   :  { %v220_v44 = vpop.f32.mrb[2].mxu1  ;;  %v2340_v43 = vld [vmem:[%s3052_s7 + $0x18] ss:$12 sps:$4 sm:$0xff]  }
 0x1b8   :  { %v231_v45 = vadd.bf16 %v230_v40, %v223_v42  ;;  %v2070_v46 = vpop.f32.mrb[3].mxu1  ;;  %v2336_v40 = vld [vmem:[%s3052_s7] ss:$12 sps:$4 sm:$0xff]   ;;  %v2342_v42 = vld [vmem:[%s3052_s7 + $0x1c] ss:$12 sps:$4 sm:$0xff]  }
 0x1b9   :  { %v2346_v44 = vld [vmem:[%s3052_s7 + $0x34] ss:$12 sps:$4 sm:$0xff]   ;;  %v2350_v46 = vld [vmem:[%s3052_s7 + $0x4c] ss:$12 sps:$4 sm:$0xff]  }
 0x1ba   :  { %v232_v47 = vmul.bf16 1009007652, %v231_v45 }
 0x1bc   :  { %v233_v48 = vmax.bf16 %v232_v47, %v231_v45  ;;  %v2344_v45 = vld [vmem:[%s3052_s7 + $0x30] ss:$12 sps:$4 sm:$0xff]   ;;  %v2348_v47 = vld [vmem:[%s3052_s7 + $0x48] ss:$12 sps:$4 sm:$0xff]  }
 0x1be   :  { %v234_v49 = vadd.bf16 %v233_v48, %v117_v29  ;;  %v2354_v48 = vld [vmem:[%s3052_s7 + $0x64] ss:$12 sps:$4 sm:$0xff]  }
 0x1c0   :  { %v235_v50 = vmul.bf16 1009007652, %v234_v49 }
 0x1c2   :  { %v236_v51 = vmax.bf16 %v235_v50, %v234_v49  ;;  %v2352_v49 = vld [vmem:[%s3052_s7 + $0x60] ss:$12 sps:$4 sm:$0xff]  }
 0x1c3   :  { %v1810_v50 = vld [vmem:[%s3050_s4 + $0x3] sm:$0x1] }
 0x1c4   :  { %2088 = vmatmul.mubr.bf16.vlgmr.msra.gmra.mrb[4].mxu0 %v236_v51 }
 0x1c5   :  { %2127 = vmatprep.mubr.msk.bf16.mxu0 %vm2423_vm0, %v2422_v0  ;;  %2112 = vmatpush3.bf16.msra.mxu0 %v2320_v56 }
 0x1c6   :  { %2113 = vmatprep.subr.bf16.mxu0 %v2422_v0 }
 0x1c9   :  { %2114 = vmatpush3.bf16.msra.mxu0 %v2321_v57 }
 0x1ca   :  { %2115 = vmatprep.subr.bf16.mxu0 %v2422_v0 }
 0x1cd   :  { %2116 = vmatpush3.bf16.msra.mxu0 %v2322_v58 }
 0x1ce   :  { %2117 = vmatprep.subr.bf16.mxu0 %v2422_v0 }
 0x1d1   :  { %2118 = vmatpush3.bf16.msra.mxu0 %v2323_v59 }
 0x1d2   :  { %2119 = vmatprep.subr.bf16.mxu0 %v2422_v0 }
 0x1d5   :  { %2120 = vmatpush3.bf16.msra.mxu0 %v2324_v11  ;;  %v2363_v11 = vld [vmem:[%s3052_s7 + $0x98] ss:$12 sps:$4 sm:$0xff]  }
 0x1d6   :  { %2121 = vmatprep.subr.bf16.mxu0 %v2422_v0 }
 0x1d9   :  { %2122 = vmatpush3.bf16.msra.mxu0 %v2325_v12  ;;  %v2366_v12 = vld [vmem:[%s3052_s7 + $0xac] ss:$12 sps:$4 sm:$0xff]  }
 0x1da   :  { %2123 = vmatprep.subr.bf16.mxu0 %v2422_v0 }
 0x1dd   :  { %2124 = vmatpush3.bf16.msra.mxu0 %v2326_v13  ;;  %v2364_v13 = vld [vmem:[%s3052_s7 + $0xa8] ss:$12 sps:$4 sm:$0xff]  }
 0x1de   :  { %2125 = vmatprep.subr.bf16.mxu0 %v2422_v0 }
 0x1e1   :  { %2126 = vmatpush3.bf16.msra.mxu0 %v2327_v14  ;;  %v2367_v14 = vld [vmem:[%s3052_s7 + $0xb0] ss:$12 sps:$4 sm:$0xff]  }
 0x1e2   :  { %877 = vmatprep.subr.bf16.mxu0 %v2338_v41  ;;  %v2380_v41 = vld [vmem:[%s3053_s9 + $0x30] sm:$0xff]  }
 0x297   :  { %v338_v63 = vpop.f32.mrb[4].mxu0 }
 0x298   :  { %v344_v1 = vpack.c.bf16 %v338_v63, %v338_v63  ;;  %v2089_v2 = vpop.f32.mrb[5].mxu0  ;;  %v2339_v63 = vld [vmem:[%s3052_s7 + $0x8] ss:$12 sps:$4 sm:$0xff]  }
 0x299   :  { %v341_v3 = vpop.f32.mrb[6].mxu0  ;;  %v2343_v2 = vld [vmem:[%s3052_s7 + $0x20] ss:$12 sps:$4 sm:$0xff]  }
 0x29a   :  { %v352_v4 = vadd.bf16 %v351_v62, %v344_v1  ;;  %v2090_v5 = vpop.f32.mrb[7].mxu0  ;;  %v2347_v3 = vld [vmem:[%s3052_s7 + $0x38] ss:$12 sps:$4 sm:$0xff]  }
 0x29b   :  { %v2355_v5 = vld [vmem:[%s3052_s7 + $0x68] ss:$12 sps:$4 sm:$0xff]  }
 0x29c   :  { %v353_v6 = vmul.bf16 1009007652, %v352_v4 }
 0x29e   :  { %v354_v7 = vmax.bf16 %v353_v6, %v352_v4  ;;  %v2351_v4 = vld [vmem:[%s3052_s7 + $0x50] ss:$12 sps:$4 sm:$0xff]  }
 0x29f   :  { %v2358_v6 = vld [vmem:[%s3052_s7 + $0x7c] ss:$12 sps:$4 sm:$0xff]  }
 0x2a0   :  { %v355_v8 = vadd.bf16 %v354_v7, %v236_v51  ;;  %v588_v51 = vpack.i.b16 %v1810_v50, %v1810_v50  ;;  %v2356_v7 = vld [vmem:[%s3052_s7 + $0x78] ss:$12 sps:$4 sm:$0xff]  }
 0x2a2   :  { %v356_v9 = vmul.bf16 1009007652, %v355_v8  ;;  %v593_v52 = vrot.slane %v588_v51, %v2576_v20 }
 0x2a4   :  { %v357_v10 = vmax.bf16 %v356_v9, %v355_v8  ;;  %v2359_v8 = vld [vmem:[%s3052_s7 + $0x80] ss:$12 sps:$4 sm:$0xff]  }
 0x2a5   :  { %v2362_v9 = vld [vmem:[%s3052_s7 + $0x94] ss:$12 sps:$4 sm:$0xff]  }
 0x2a6   :  { %2108 = vmatmul.mubr.bf16.vlgmr.msra.gmra.mrb[4].mxu1 %v357_v10 }
 0x2a7   :  { %2147 = vmatprep.mubr.msk.bf16.mxu1 %vm2423_vm0, %v2422_v0  ;;  %2132 = vmatpush3.bf16.msra.mxu1 %v2328_v15  ;;  %v2424_v15 = vmov 0  }
 0x2a8   :  { %2133 = vmatprep.subr.bf16.mxu1 %v2422_v0 }
 0x2ab   :  { %2134 = vmatpush3.bf16.msra.mxu1 %v2329_v18  ;;  %v616_v18 = vld [vmem:[%s3054_s6] sm:$0x1] }
 0x2ac   :  { %2135 = vmatprep.subr.bf16.mxu1 %v2422_v0 }
 0x2af   :  { %2136 = vmatpush3.bf16.msra.mxu1 %v2330_v19  ;;  %v707_v19 = vpack.i.b16 %v616_v18, %v616_v18 }
 0x2b0   :  { %2137 = vmatprep.subr.bf16.mxu1 %v2422_v0 }
 0x2b3   :  { %2138 = vmatpush3.bf16.msra.mxu1 %v2331_v21  ;;  %v712_v21 = vrot.slane %v707_v19, %v2576_v20  ;;  %v2392_v19 = vld [vmem:[%s3055_s12] sm:$0xff]  }
 0x2b4   :  { %2139 = vmatprep.subr.bf16.mxu1 %v2422_v0 }
 0x2b7   :  { %2140 = vmatpush3.bf16.msra.mxu1 %v2332_v36  ;;  %v2375_v36 = vld [vmem:[%s3053_s9 + $0x58] sm:$0xff]  }
 0x2b8   :  { %2141 = vmatprep.subr.bf16.mxu1 %v2422_v0 }
 0x2bb   :  { %2142 = vmatpush3.bf16.msra.mxu1 %v2333_v37  ;;  %v2376_v37 = vld [vmem:[%s3053_s9 + $0x20] sm:$0xff]  }
 0x2bc   :  { %2143 = vmatprep.subr.bf16.mxu1 %v2422_v0 }
 0x2bf   :  { %2144 = vmatpush3.bf16.msra.mxu1 %v2334_v38  ;;  %v2377_v38 = vld [vmem:[%s3053_s9 + $0x60] sm:$0xff]  }
 0x2c0   :  { %2145 = vmatprep.subr.bf16.mxu1 %v2422_v0 }
 0x2c3   :  { %2146 = vmatpush3.bf16.msra.mxu1 %v2335_v39  ;;  %v2378_v39 = vld [vmem:[%s3053_s9 + $0x28] sm:$0xff]  }
 0x2c4   :  { %2151 = vmatprep.subr.bf16.mxu1 %v2422_v0 }
 0x379   :  { %v459_v25 = vpop.f32.mrb[4].mxu1 }
 0x37a   :  { %v465_v26 = vpack.c.bf16 %v459_v25, %v459_v25  ;;  %v2109_v27 = vpop.f32.mrb[5].mxu1 }
 0x37b   :  { %v462_v28 = vpop.f32.mrb[6].mxu1 }
 0x37c   :  { %v473_v29 = vadd.bf16 %v472_v24, %v465_v26  ;;  %v2110_v30 = vpop.f32.mrb[7].mxu1  ;;  %v2368_v28 = vld [vmem:[%s3053_s9] sm:$0xff]  }
 0x37e   :  { %v474_v31 = vmul.bf16 1009007652, %v473_v29 }
 0x380   :  { %v475_v32 = vmax.bf16 %v474_v31, %v473_v29  ;;  %v2369_v29 = vld [vmem:[%s3053_s9 + $0x40] sm:$0xff]   ;;  %v2370_v31 = vld [vmem:[%s3053_s9 + $0x8] sm:$0xff]  }
 0x382   :  { %v476_v33 = vadd.bf16 %v475_v32, %v357_v10  ;;  %v2360_v10 = vld [vmem:[%s3052_s7 + $0x90] ss:$12 sps:$4 sm:$0xff]   ;;  %v2371_v32 = vld [vmem:[%s3053_s9 + $0x48] sm:$0xff]  }
 0x384   :  { %v477_v34 = vmul.bf16 1009007652, %v476_v33 }
 0x386   :  { %v478_v35 = vmax.bf16 %v477_v34, %v476_v33  ;;  %v2372_v33 = vld [vmem:[%s3053_s9 + $0x10] sm:$0xff]  }
 0x387   :  { %v2373_v34 = vld [vmem:[%s3053_s9 + $0x50] sm:$0xff]  }
 0x388   :  { %2128 = vmatmul.mubr.bf16.vlgmr.msra.gmra.mrb[8].mxu0 %v478_v35 }
 0x389   :  { %878 = vmatpush1.bf16.msra.mxu0 %v2336_v40  ;;  %909 = vmatprep.mubr.bf16.mxu0 %v2424_v15  ;;  %v2379_v40 = vld [vmem:[%s3053_s9 + $0x68] sm:$0xff]  }
 0x38a   :  { %879 = vmatprep.subr.bf16.mxu0 %v2342_v42  ;;  %v2381_v42 = vld [vmem:[%s3053_s9 + $0x70] sm:$0xff]  }
 0x38d   :  { %880 = vmatpush1.bf16.msra.mxu0 %v2340_v43  ;;  %v2382_v43 = vld [vmem:[%s3053_s9 + $0x38] sm:$0xff]  }
 0x38e   :  { %881 = vmatprep.subr.bf16.mxu0 %v2346_v44  ;;  %v2383_v44 = vld [vmem:[%s3053_s9 + $0x78] sm:$0xff]  }
 0x391   :  { %882 = vmatpush1.bf16.msra.mxu0 %v2344_v45  ;;  %v2425_v45 = vmov 1966171168  }
 0x392   :  { %883 = vmatprep.subr.bf16.mxu0 %v2350_v46  ;;  %v971_v46 = vunpack.c.l.s4 %v2425_v45  ;;  %v2401_v45 = vld [vmem:[%s3056_s11 + $0x20] sm:$0xff]  }
 0x395   :  { %884 = vmatpush1.bf16.msra.mxu0 %v2348_v47  ;;  %v1851_v47 = vld.sshfl [vmem:[%s3057_s8] sm:$0x13 pattern:$0x75316420] }
 0x396   :  { %885 = vmatprep.subr.bf16.mxu0 %v2354_v48  ;;  %v972_v48 = vunpack.c.0.s8 %v971_v46  ;;  %v2402_v46 = vld [vmem:[%s3055_s12 + $0x28] sm:$0xff]  }
 0x398   :  { %v975_v50 = vsub.s32 %v972_v48, %v2570_v17  ;;  %v2404_v48 = vld [vmem:[%s3055_s12 + $0x30] sm:$0xff]  }
 0x399   :  { %886 = vmatpush1.bf16.msra.mxu0 %v2352_v49  ;;  %v969_v49 = vcombine.high %v1851_v47, %v1851_v47 }
 0x39a   :  { %887 = vmatprep.subr.bf16.mxu0 %v2358_v6 }
 0x39b   :  { %v983_v51 = vrot.slane %v969_v49, %v975_v50  ;;  %v2405_v49 = vld [vmem:[%s3056_s11 + $0x30] sm:$0xff]  }
 0x39d   :  { %888 = vmatpush1.bf16.msra.mxu0 %v2356_v7 }
 0x39e   :  { %889 = vmatprep.subr.bf16.mxu0 %v2362_v9 }
 0x3a1   :  { %890 = vmatpush1.bf16.msra.mxu0 %v2360_v10 }
 0x3a2   :  { %891 = vmatprep.subr.bf16.mxu0 %v2366_v12 }
 0x3a5   :  { %892 = vmatpush1.bf16.msra.mxu0 %v2364_v13  ;;  %v2384_v13 = vld [vmem:[%s3053_s9 + $0x80] sm:$0xff]  }
 0x3a6   :  { %2171 = vmatprep.subr.bf16.mxu0 %v2422_v0 }
 0x45b   :  { %v580_v53 = vpop.f32.mrb[8].mxu0 }
 0x45c   :  { %v586_v54 = vpack.c.bf16 %v580_v53, %v580_v53  ;;  %v2129_v55 = vpop.f32.mrb[9].mxu0 }
 0x45d   :  { %v583_v56 = vpop.f32.mrb[10].mxu0 }
 0x45e   :  { %v594_v57 = vadd.bf16 %v593_v52, %v586_v54  ;;  %v2130_v58 = vpop.f32.mrb[11].mxu0  ;;  %v976_v52 = vrot.slane %v1851_v47, %v975_v50  ;;  %v993_v54 = vpack.i.b16 %v983_v51, %v983_v51  ;;  %v2403_v47 = vld [vmem:[%s3056_s11 + $0x28] sm:$0xff]   ;;  %v2406_v50 = vld [vmem:[%s3055_s12 + $0x38] sm:$0xff]  }
 0x45f   :  { %v2407_v51 = vld [vmem:[%s3056_s11 + $0x38] sm:$0xff]  }
 0x460   :  { %v595_v59 = vmul.bf16 1009007652, %v594_v57  ;;  %v986_v53 = vpack.i.b16 %v976_v52, %v976_v52  ;;  %v998_v58 = vrot.slane %v993_v54, %v2576_v20 }
 0x462   :  { %v596_v60 = vmax.bf16 %v595_v59, %v594_v57  ;;  %v991_v55 = vrot.slane %v986_v53, %v2576_v20  ;;  %v1876_v53 = vld [vmem:[%s3059_s10 + $0x1] sm:$0x1] }
 0x464   :  { %v597_v61 = vadd.bf16 %v596_v60, %v478_v35  ;;  %v2374_v35 = vld [vmem:[%s3053_s9 + $0x18] sm:$0xff]  }
 0x466   :  { %v598_v62 = vmul.bf16 1009007652, %v597_v61 }
 0x468   :  { %v599_v1 = vmax.bf16 %v598_v62, %v597_v61 }
 0x46a   :  { %2148 = vmatmul.mubr.bf16.vlgmr.msra.gmra.mrb[8].mxu1 %v599_v1 }
 0x46b   :  { %2152 = vmatpush3.bf16.msra.mxu1 %v2339_v63  ;;  %2167 = vmatprep.mubr.msk.bf16.mxu1 %vm2423_vm0, %v2422_v0 }
 0x46c   :  { %2153 = vmatprep.subr.bf16.mxu1 %v2422_v0 }
 0x46f   :  { %2154 = vmatpush3.bf16.msra.mxu1 %v2343_v2 }
 0x470   :  { %2155 = vmatprep.subr.bf16.mxu1 %v2422_v0 }
 0x473   :  { %2156 = vmatpush3.bf16.msra.mxu1 %v2347_v3 }
 0x474   :  { %2157 = vmatprep.subr.bf16.mxu1 %v2422_v0 }
 0x477   :  { %2158 = vmatpush3.bf16.msra.mxu1 %v2351_v4 }
 0x478   :  { %2159 = vmatprep.subr.bf16.mxu1 %v2422_v0 }
 0x47b   :  { %2160 = vmatpush3.bf16.msra.mxu1 %v2355_v5 }
 0x47c   :  { %2161 = vmatprep.subr.bf16.mxu1 %v2422_v0 }
 0x47f   :  { %2162 = vmatpush3.bf16.msra.mxu1 %v2359_v8 }
 0x480   :  { %2163 = vmatprep.subr.bf16.mxu1 %v2422_v0 }
 0x483   :  { %2164 = vmatpush3.bf16.msra.mxu1 %v2363_v11 }
 0x484   :  { %2165 = vmatprep.subr.bf16.mxu1 %v2422_v0 }
 0x487   :  { %2166 = vmatpush3.bf16.msra.mxu1 %v2367_v14  ;;  %v984_v14 = vcombine.high %v976_v52, %v976_v52  ;;  %v1040_v52 = vld [vmem:[%s3059_s10] sm:$0x1] }
 0x488   :  { %2191 = vmatprep.subr.bf16.mxu1 %v2422_v0  ;;  %v1131_v54 = vpack.i.b16 %v1040_v52, %v1040_v52 }
 0x53d   :  { %v699_v22 = vpop.f32.mrb[8].mxu1 }
 0x53e   :  { %v705_v23 = vpack.c.bf16 %v699_v22, %v699_v22  ;;  %v2149_v24 = vpop.f32.mrb[9].mxu1  ;;  %v1000_v22 = vpack.i.b16 %v984_v14, %v984_v14 }
 0x53f   :  { %v702_v25 = vpop.f32.mrb[10].mxu1  ;;  %v2386_v24 = vld [vmem:[%s3053_s9 + $0x90] sm:$0xff]  }
 0x540   :  { %v713_v26 = vadd.bf16 %v712_v21, %v705_v23  ;;  %v2150_v27 = vpop.f32.mrb[11].mxu1  ;;  %v2385_v21 = vld [vmem:[%s3053_s9 + $0x88] sm:$0xff]  }
 0x541   :  { %v2394_v23 = vld [vmem:[%s3055_s12 + $0x8] sm:$0xff]   ;;  %v2396_v27 = vld [vmem:[%s3055_s12 + $0x10] sm:$0xff]  }
 0x542   :  { %714 = vst [vmem:[#allocation2] sm:$0xf] %v713_v26  ;;  %v1005_v26 = vrot.slane %v1000_v22, %v2576_v20  ;;  %v2409_v22 = vld [vmem:[%s3058_s13 + $0x8] sm:$0xff]  }
 0x549   :  { %v2805_v30 = vld [vmem:[#allocation2] sm:$0xf] }
 0x54a   :  { %910 = vmatmul.mubr.bf16.vlgmr.msra.gmra.mrb[12].mxu0 %v2805_v30  ;;  %2168 = vmatmul.mubr.bf16.vlgmr.msra.gmra.mrb[12].mxu1 %v2805_v30 }
 0x54b   :  { %2172 = vmatpush3.bf16.msra.mxu0 %v2368_v28  ;;  %2192 = vmatpush3.bf16.msra.mxu1 %v2369_v29  ;;  %v2387_v28 = vld [vmem:[%s3053_s9 + $0x98] sm:$0xff]  }
 0x54c   :  { %2173 = vmatprep.subr.bf16.mxu0 %v2422_v0  ;;  %2193 = vmatprep.subr.bf16.mxu1 %v2422_v0 }
 0x54d   :  { %2187 = vmatprep.mubr.msk.bf16.mxu0 %vm2423_vm0, %v2422_v0  ;;  %2207 = vmatprep.mubr.msk.bf16.mxu1 %vm2423_vm0, %v2422_v0 }
 0x54f   :  { %2174 = vmatpush3.bf16.msra.mxu0 %v2370_v31  ;;  %2194 = vmatpush3.bf16.msra.mxu1 %v2371_v32  ;;  %v2398_v31 = vld [vmem:[%s3055_s12 + $0x18] sm:$0xff]   ;;  %v2388_v32 = vld [vmem:[%s3053_s9 + $0xa0] sm:$0xff]  }
 0x550   :  { %2175 = vmatprep.subr.bf16.mxu0 %v2422_v0  ;;  %2195 = vmatprep.subr.bf16.mxu1 %v2422_v0 }
 0x553   :  { %2176 = vmatpush3.bf16.msra.mxu0 %v2372_v33  ;;  %2196 = vmatpush3.bf16.msra.mxu1 %v2373_v34  ;;  %v2389_v34 = vld [vmem:[%s3053_s9 + $0xa8] sm:$0xff]  }
 0x554   :  { %2177 = vmatprep.subr.bf16.mxu0 %v2422_v0  ;;  %2197 = vmatprep.subr.bf16.mxu1 %v2422_v0 }
 0x557   :  { %2178 = vmatpush3.bf16.msra.mxu0 %v2374_v35  ;;  %2198 = vmatpush3.bf16.msra.mxu1 %v2375_v36  ;;  %v2390_v36 = vld [vmem:[%s3053_s9 + $0xb0] sm:$0xff]  }
 0x558   :  { %2179 = vmatprep.subr.bf16.mxu0 %v2422_v0  ;;  %2199 = vmatprep.subr.bf16.mxu1 %v2422_v0 }
 0x55b   :  { %2180 = vmatpush3.bf16.msra.mxu0 %v2376_v37  ;;  %2200 = vmatpush3.bf16.msra.mxu1 %v2377_v38  ;;  %v2391_v38 = vld [vmem:[%s3053_s9 + $0xb8] sm:$0xff]  }
 0x55c   :  { %2181 = vmatprep.subr.bf16.mxu0 %v2422_v0  ;;  %2201 = vmatprep.subr.bf16.mxu1 %v2422_v0 }
 0x55f   :  { %2182 = vmatpush3.bf16.msra.mxu0 %v2378_v39  ;;  %2202 = vmatpush3.bf16.msra.mxu1 %v2379_v40  ;;  %v2393_v40 = vld [vmem:[%s3056_s11] sm:$0xff]  }
 0x560   :  { %2183 = vmatprep.subr.bf16.mxu0 %v2422_v0  ;;  %2203 = vmatprep.subr.bf16.mxu1 %v2422_v0 }
 0x563   :  { %2184 = vmatpush3.bf16.msra.mxu0 %v2380_v41  ;;  %2204 = vmatpush3.bf16.msra.mxu1 %v2381_v42  ;;  %v2397_v42 = vld [vmem:[%s3056_s11 + $0x10] sm:$0xff]  }
 0x564   :  { %2185 = vmatprep.subr.bf16.mxu0 %v2422_v0  ;;  %2205 = vmatprep.subr.bf16.mxu1 %v2422_v0 }
 0x567   :  { %2186 = vmatpush3.bf16.msra.mxu0 %v2382_v43  ;;  %2206 = vmatpush3.bf16.msra.mxu1 %v2383_v44  ;;  %v2399_v43 = vld [vmem:[%s3056_s11 + $0x18] sm:$0xff]   ;;  %v2400_v44 = vld [vmem:[%s3055_s12 + $0x20] sm:$0xff]  }
 0x568   :  { %2211 = vmatprep.subr.bf16.mxu0 %v2422_v0  ;;  %2231 = vmatprep.subr.bf16.mxu1 %v2422_v0 }
 0x61d   :  { %v911_v56 = vpop.f32.mrb[12].mxu0  ;;  %v952_v57 = vpop.f32.mrb[12].mxu1 }
 0x61e   :  { %v958_v59 = vpack.c.bf16 %v911_v56, %v911_v56  ;;  %v913_v60 = vpop.f32.mrb[13].mxu0  ;;  %v2169_v61 = vpop.f32.mrb[13].mxu1  ;;  %v960_v25 = vpack.c.bf16 %v952_v57, %v952_v57  ;;  %v1136_v56 = vrot.slane %v1131_v54, %v2576_v20 }
 0x61f   :  { %v959_v62 = vpack.c.bf16 %v913_v60, %v913_v60  ;;  %v915_v63 = vpop.f32.mrb[14].mxu0  ;;  %v955_v1 = vpop.f32.mrb[14].mxu1 }
 0x620   :  { %v1006_v2 = vadd.bf16 %v991_v55, %v958_v59  ;;  %v916_v3 = vpop.f32.mrb[15].mxu0  ;;  %v2170_v4 = vpop.f32.mrb[15].mxu1  ;;  %v1008_v29 = vadd.bf16 %v1005_v26, %v960_v25  ;;  %v1252_v55 = vpack.i.b16 %v1876_v53, %v1876_v53  ;;  %v2412_v25 = vld [vmem:[%s3058_s13 + $0x20] sm:$0xff]  }
 0x621   :  { %v1007_v17 = vadd.bf16 %v998_v58, %v959_v62 }
 0x622   :  { %v1009_v5 = vmul.bf16 1009007652, %v1006_v2  ;;  %v1011_v33 = vmul.bf16 1009007652, %v1008_v29  ;;  %v1257_v58 = vrot.slane %v1252_v55, %v2576_v20 }
 0x623   :  { %v1010_v6 = vmul.bf16 1009007652, %v1007_v17 }
 0x624   :  { %v1012_v7 = vmax.bf16 %v1009_v5, %v1006_v2  ;;  %v1014_v35 = vmax.bf16 %v1011_v33, %v1008_v29 }
 0x625   :  { %v1013_v8 = vmax.bf16 %v1010_v6, %v1007_v17 }
 0x626   :  { %v1015_v9 = vadd.bf16 %v1012_v7, %v2805_v30  ;;  %v1021_v37 = vadd.bf16 %v1014_v35, %v2805_v30 }
 0x627   :  { %v1018_v10 = vadd.bf16 %v1013_v8, %v2805_v30  ;;  %v2395_v30 = vld [vmem:[%s3056_s11 + $0x8] sm:$0xff]  }
 0x628   :  { %v1016_v11 = vmul.bf16 1009007652, %v1015_v9  ;;  %v1022_v39 = vmul.bf16 1009007652, %v1021_v37 }
 0x629   :  { %v1019_v12 = vmul.bf16 1009007652, %v1018_v10 }
 0x62a   :  { %v2882_v15 = vmax.bf16 %v1016_v11, %v1015_v9  ;;  %v2941_v41 = vmax.bf16 %v1022_v39, %v1021_v37 }
 0x62b   :  { %v2884_v18 = vmax.bf16 %v1019_v12, %v1018_v10 }
 0x62c   :  { %2188 = vmatmul.mubr.bf16.vlgmr.msra.gmra.mrb[16].mxu0 %v2882_v15 }
 0x62d   :  { %2212 = vmatpush3.bf16.msra.mxu0 %v2384_v13  ;;  %2208 = vmatmul.mubr.bf16.vlgmr.msra.gmra.mrb[16].mxu1 %v2884_v18 }
 0x62e   :  { %2213 = vmatprep.subr.bf16.mxu0 %v2422_v0  ;;  %2227 = vmatprep.mubr.msk.bf16.mxu0 %vm2423_vm0, %v2422_v0 }
 0x62f   :  { %2232 = vmatpush3.bf16.msra.mxu1 %v2392_v19  ;;  %2247 = vmatprep.mubr.msk.bf16.mxu1 %vm2423_vm0, %v2422_v0  ;;  %v2408_v19 = vld [vmem:[%s3058_s13] sm:$0xff]  }
 0x630   :  { %2233 = vmatprep.subr.bf16.mxu1 %v2422_v0 }
 0x631   :  { %2214 = vmatpush3.bf16.msra.mxu0 %v2385_v21 }
 0x632   :  { %2215 = vmatprep.subr.bf16.mxu0 %v2422_v0 }
 0x633   :  { %2234 = vmatpush3.bf16.msra.mxu1 %v2394_v23  ;;  %v2411_v23 = vld [vmem:[%s3058_s13 + $0x18] sm:$0xff]  }
 0x634   :  { %2235 = vmatprep.subr.bf16.mxu1 %v2422_v0 }
 0x635   :  { %2216 = vmatpush3.bf16.msra.mxu0 %v2386_v24 }
 0x636   :  { %2217 = vmatprep.subr.bf16.mxu0 %v2422_v0 }
 0x637   :  { %2236 = vmatpush3.bf16.msra.mxu1 %v2396_v27 }
 0x638   :  { %2237 = vmatprep.subr.bf16.mxu1 %v2422_v0 }
 0x639   :  { %2218 = vmatpush3.bf16.msra.mxu0 %v2387_v28 }
 0x63a   :  { %2219 = vmatprep.subr.bf16.mxu0 %v2422_v0 }
 0x63b   :  { %2238 = vmatpush3.bf16.msra.mxu1 %v2398_v31  ;;  %v2413_v31 = vld [vmem:[%s3058_s13 + $0x28] sm:$0xff]  }
 0x63c   :  { %2239 = vmatprep.subr.bf16.mxu1 %v2422_v0 }
 0x63d   :  { %2220 = vmatpush3.bf16.msra.mxu0 %v2388_v32 }
 0x63e   :  { %2221 = vmatprep.subr.bf16.mxu0 %v2422_v0 }
 0x63f   :  { %2240 = vmatpush3.bf16.msra.mxu1 %v2400_v44 }
 0x640   :  { %2241 = vmatprep.subr.bf16.mxu1 %v2422_v0 }
 0x641   :  { %2222 = vmatpush3.bf16.msra.mxu0 %v2389_v34 }
 0x642   :  { %2223 = vmatprep.subr.bf16.mxu0 %v2422_v0 }
 0x643   :  { %2242 = vmatpush3.bf16.msra.mxu1 %v2402_v46 }
 0x644   :  { %2243 = vmatprep.subr.bf16.mxu1 %v2422_v0 }
 0x645   :  { %2224 = vmatpush3.bf16.msra.mxu0 %v2390_v36  ;;  %v2414_v36 = vld [vmem:[%s3058_s13 + $0x30] sm:$0xff]  }
 0x646   :  { %2225 = vmatprep.subr.bf16.mxu0 %v2422_v0 }
 0x647   :  { %2244 = vmatpush3.bf16.msra.mxu1 %v2404_v48 }
 0x648   :  { %2245 = vmatprep.subr.bf16.mxu1 %v2422_v0 }
 0x649   :  { %2226 = vmatpush3.bf16.msra.mxu0 %v2391_v38  ;;  %v2415_v38 = vld [vmem:[%s3058_s13 + $0x38] sm:$0xff]  }
 0x64a   :  { %2251 = vmatprep.subr.bf16.mxu0 %v2422_v0 }
 0x64b   :  { %2246 = vmatpush3.bf16.msra.mxu1 %v2406_v50  ;;  %v1934_v50 = vld [vmem:[%s3060_s14] ss:$0 sm:$0xff] }
 0x64c   :  { %2228 = vmatmul.mubr.bf16.vlgmr.msra.gmra.mrb[20].mxu0 %v2941_v41  ;;  %2271 = vmatprep.subr.bf16.mxu1 %v2422_v0 }
 0x64d   :  { %2252 = vmatpush3.bf16.msra.mxu0 %v2393_v40  ;;  %2267 = vmatprep.mubr.msk.bf16.mxu0 %vm2423_vm0, %v2422_v0 }
 0x64e   :  { %2253 = vmatprep.subr.bf16.mxu0 %v2422_v0 }
 0x651   :  { %2254 = vmatpush3.bf16.msra.mxu0 %v2395_v30 }
 0x652   :  { %2255 = vmatprep.subr.bf16.mxu0 %v2422_v0 }
 0x655   :  { %2256 = vmatpush3.bf16.msra.mxu0 %v2397_v42 }
 0x656   :  { %2257 = vmatprep.subr.bf16.mxu0 %v2422_v0 }
 0x659   :  { %2258 = vmatpush3.bf16.msra.mxu0 %v2399_v43 }
 0x65a   :  { %2259 = vmatprep.subr.bf16.mxu0 %v2422_v0 }
 0x65d   :  { %2260 = vmatpush3.bf16.msra.mxu0 %v2401_v45 }
 0x65e   :  { %2261 = vmatprep.subr.bf16.mxu0 %v2422_v0 }
 0x661   :  { %2262 = vmatpush3.bf16.msra.mxu0 %v2403_v47 }
 0x662   :  { %2263 = vmatprep.subr.bf16.mxu0 %v2422_v0 }
 0x665   :  { %2264 = vmatpush3.bf16.msra.mxu0 %v2405_v49 }
 0x666   :  { %2265 = vmatprep.subr.bf16.mxu0 %v2422_v0 }
 0x669   :  { %2266 = vmatpush3.bf16.msra.mxu0 %v2407_v51 }
 0x6ff   :  { %v1123_v57 = vpop.f32.mrb[16].mxu0 }
 0x700   :  { %v1129_v59 = vpack.c.bf16 %v1123_v57, %v1123_v57  ;;  %v2189_v60 = vpop.f32.mrb[17].mxu0  ;;  %v1244_v61 = vpop.f32.mrb[16].mxu1 }
 0x701   :  { %v1250_v62 = vpack.c.bf16 %v1244_v61, %v1244_v61  ;;  %v1126_v63 = vpop.f32.mrb[18].mxu0  ;;  %v2209_v1 = vpop.f32.mrb[17].mxu1 }
 0x702   :  { %v1137_v2 = vadd.bf16 %v1136_v56, %v1129_v59  ;;  %v2190_v3 = vpop.f32.mrb[19].mxu0  ;;  %v1247_v4 = vpop.f32.mrb[18].mxu1  ;;  %v1707_v63 = vand.u32 127, %v111_v16 }
 0x703   :  { %v1258_v17 = vadd.bf16 %v1257_v58, %v1250_v62  ;;  %v2210_v5 = vpop.f32.mrb[19].mxu1 }
 0x704   :  { %v1138_v6 = vmul.bf16 1009007652, %v1137_v2  ;;  %vm1726_vm3 = vcmp.lt.s32.totalorder %v1707_v63, 12  ;;  %vm1725_vm5 = vcmp.lt.s32.totalorder %v1707_v63, 8 }
 0x705   :  { %v1259_v7 = vmul.bf16 1009007652, %v1258_v17 }
 0x706   :  { %v1139_v8 = vmax.bf16 %v1138_v6, %v1137_v2 }
 0x707   :  { %v1260_v9 = vmax.bf16 %v1259_v7, %v1258_v17 }
 0x708   :  { %v1140_v10 = vadd.bf16 %v1139_v8, %v2882_v15  ;;  %v2410_v15 = vld [vmem:[%s3058_s13 + $0x10] sm:$0xff]  }
 0x709   :  { %v1261_v11 = vadd.bf16 %v1260_v9, %v2884_v18  ;;  %v1901_v18 = vld [vmem:[%s3059_s10 + $0x2] sm:$0x1] }
 0x70a   :  { %v1141_v12 = vmul.bf16 1009007652, %v1140_v10  ;;  %v1373_v24 = vpack.i.b16 %v1901_v18, %v1901_v18 }
 0x70b   :  { %v1262_v13 = vmul.bf16 1009007652, %v1261_v11 }
 0x70c   :  { %v1142_v14 = vmax.bf16 %v1141_v12, %v1140_v10  ;;  %v1378_v26 = vrot.slane %v1373_v24, %v2576_v20 }
 0x70d   :  { %v1263_v21 = vmax.bf16 %v1262_v13, %v1261_v11 }
 0x70e   :  { %2268 = vmatmul.mubr.bf16.vlgmr.msra.gmra.mrb[24].mxu0 %v1142_v14 }
 0x70f   :  { %2248 = vmatmul.mubr.bf16.vlgmr.msra.gmra.mrb[20].mxu1 %v1263_v21 }
 0x710   :  { %2272 = vmatpush3.bf16.msra.mxu1 %v2408_v19  ;;  %2287 = vmatprep.mubr.msk.bf16.mxu1 %vm2423_vm0, %v2422_v0 }
 0x711   :  { %2273 = vmatprep.subr.bf16.mxu1 %v2422_v0 }
 0x714   :  { %2274 = vmatpush3.bf16.msra.mxu1 %v2409_v22 }
 0x715   :  { %2275 = vmatprep.subr.bf16.mxu1 %v2422_v0 }
 0x718   :  { %2276 = vmatpush3.bf16.msra.mxu1 %v2410_v15 }
 0x719   :  { %2277 = vmatprep.subr.bf16.mxu1 %v2422_v0 }
 0x71c   :  { %2278 = vmatpush3.bf16.msra.mxu1 %v2411_v23 }
 0x71d   :  { %2279 = vmatprep.subr.bf16.mxu1 %v2422_v0 }
 0x71f   :  { %v1365_v27 = vpop.f32.mrb[20].mxu0 }
 0x720   :  { %v1371_v28 = vpack.c.bf16 %v1365_v27, %v1365_v27  ;;  %v2229_v29 = vpop.f32.mrb[21].mxu0  ;;  %2280 = vmatpush3.bf16.msra.mxu1 %v2412_v25 }
 0x721   :  { %v1368_v32 = vpop.f32.mrb[22].mxu0  ;;  %2281 = vmatprep.subr.bf16.mxu1 %v2422_v0 }
 0x722   :  { %v1379_v33 = vadd.bf16 %v1378_v26, %v1371_v28  ;;  %v2230_v34 = vpop.f32.mrb[23].mxu0 }
 0x724   :  { %v1380_v35 = vmul.bf16 1009007652, %v1379_v33  ;;  %2282 = vmatpush3.bf16.msra.mxu1 %v2413_v31 }
 0x725   :  { %2283 = vmatprep.subr.bf16.mxu1 %v2422_v0 }
 0x726   :  { %v1381_v20 = vmax.bf16 %v1380_v35, %v1379_v33 }
 0x728   :  { %v1382_v37 = vadd.bf16 %v1381_v20, %v2941_v41  ;;  %2284 = vmatpush3.bf16.msra.mxu1 %v2414_v36 }
 0x729   :  { %2285 = vmatprep.subr.bf16.mxu1 %v2422_v0 }
 0x72a   :  { %v1383_v39 = vmul.bf16 1009007652, %v1382_v37 }
 0x72c   :  { %2286 = vmatpush3.bf16.msra.mxu1 %v2415_v38  ;;  %v1384_v40 = vmax.bf16 %v1383_v39, %v1382_v37 }
 0x72f   :  { %2288 = vmatmul.mubr.bf16.vlgmr.msra.gmra.mrb[24].mxu1 %v1384_v40 }
 0x7e1   :  { %v1587_v30 = vpop.f32.mrb[24].mxu0 }
 0x7e2   :  { %v1499_v42 = vpop.f32.mrb[20].mxu1  ;;  %v2269_v43 = vpop.f32.mrb[25].mxu0 }
 0x7e3   :  { %v1588_v44 = vadd.f32 %v1587_v30, %v1499_v42  ;;  %v2249_v45 = vpop.f32.mrb[21].mxu1  ;;  %v1590_v46 = vpop.f32.mrb[26].mxu0 }
 0x7e4   :  { %v1502_v47 = vpop.f32.mrb[22].mxu1  ;;  %v2270_v48 = vpop.f32.mrb[27].mxu0 }
 0x7e5   :  { %v2250_v41 = vpop.f32.mrb[23].mxu1 }
 0x802   :  { %v1691_v49 = vpop.f32.mrb[24].mxu1 }
 0x803   :  { %v1697_v51 = vadd.f32 %v1691_v49, %v1588_v44  ;;  %v2289_v0 = vpop.f32.mrb[25].mxu1 }
 0x804   :  { %v1694_v52 = vpop.f32.mrb[26].mxu1 }
 0x805   :  { %v1705_v53 = vadd.f32 %v1934_v50, %v1697_v51  ;;  %v2290_v54 = vpop.f32.mrb[27].mxu1 }
 0x807   :  { %v1709_v55 = vmul.f32 5.0, %v1705_v53 }
 0x809   :  { %v1711_v56 = vmul.f32 1.442695, %v1709_v55  ;;  %vm1710_vm4 = vcmp.gt.f32.partialorder %v1709_v55, 20.0 }
 0x80b   :  { %2416 = vpow2.f32 %v1711_v56 }
 0x815   :  { %v2417_v57 = vpop.eup %2416 }
 0x816   :  { %v1713_v58 = vadd.f32 1.0, %v2417_v57  ;;  %v1716_v59 = vmul.f32 -0.5, %v2417_v57  ;;  %v1719_v61 = vand.u32 2147483647, %v2417_v57 }
 0x818   :  { %2418 = vlog2.f32 %v1713_v58  ;;  %v1717_v60 = vadd.f32 1.0, %v1716_v59  ;;  %vm1720_vm2 = vcmp.lt.f32.partialorder %v1719_v61, 0.0004427343 }
 0x819   :  { %2420 = vtanh.f32 %v1705_v53 }
 0x81a   :  { %v1718_v2 = vmul.f32 %v2417_v57, %v1717_v60 }
 0x822   :  { %v2419_v62 = vpop.eup %2418 }
 0x823   :  { %v1715_v1 = vmul.f32 0.6931472, %v2419_v62  ;;  %v2421_v5 = vpop.eup %2420 }
 0x825   :  { %v1721_v3 = vsel %vm1720_vm2, %v1718_v2, %v1715_v1 }
 0x826   :  { %v1723_v4 = vmul.f32 0.2, %v1721_v3 }
 0x828   :  { %v1724_v17 = vsel %vm1710_vm4, %v1705_v53, %v1723_v4 }
 0x829   :  { %v1727_v6 = vsel %vm1726_vm3, %v1705_v53, %v1724_v17 }
 0x82a   :  { %v1728_v7 = vsel %vm1725_vm5, %v2421_v5, %v1727_v6 }
 0x82b   :  { %1729 = vst [vmem:[%s3061_s15] sm:$0xff] %v1728_v7 }

</bundles_post_ra>
